<compile_context>
chip_gen: v7x
topology: tpu7x:2x2x1
jax: 0.10.0
libtpu: 0.0.40
codegen_flags: <defaults>
</compile_context>

<pallas_src>
import functools

import jax
import jax.numpy as jnp
from jax.experimental import pallas as pl
from jax.experimental.pallas import tpu as pltpu

CP = 128   # lane-padded channel width of all feature maps
NCP = 8    # sublane-padded number of classes in the final output


# --------------------------------------------------------------------------- #
# Constant operator matrices — all O(W^2) / O(H^2) sized (no O((HW)^2) blowup).
# --------------------------------------------------------------------------- #
def _interp_matrix(out_size, in_size):
    """1-D bilinear interpolation matrix (out, in), align_corners=True."""
    if in_size == 1:
        return jnp.ones((out_size, 1), jnp.float32)
    if out_size == 1:
        return jnp.zeros((1, in_size), jnp.float32).at[0, 0].set(1.0)
    idx = jnp.arange(out_size, dtype=jnp.float32) * (in_size - 1) / (out_size - 1)
    i0 = jnp.clip(jnp.floor(idx).astype(jnp.int32), 0, in_size - 2)
    frac = idx - i0.astype(jnp.float32)
    cols = jnp.arange(in_size)
    w0 = (cols[None, :] == i0[:, None]).astype(jnp.float32) * (1.0 - frac)[:, None]
    w1 = (cols[None, :] == (i0 + 1)[:, None]).astype(jnp.float32) * frac[:, None]
    return w0 + w1


def _block_pool4_matrix(W):
    """(W/2, 8*W): 4x4 average pooling of one 8-image-row channel-last block."""
    W4 = W // 4
    r = jnp.arange(2 * W4)
    a, j = r // W4, r % W4
    c = jnp.arange(8 * W)
    rr, w = c // W, c % W
    m = (rr[None, :] // 4 == a[:, None]) & (w[None, :] // 4 == j[:, None])
    return m.astype(jnp.float32) / 16.0


def _pool2_from_pool4_matrix(W):
    """(W/8, W/2): 2x2 average of the two pooled4 rows of one block (item 3)."""
    W4, W8 = W // 4, W // 8
    c = jnp.arange(2 * W4)
    j = c % W4
    jj = jnp.arange(W8)
    m = (j[None, :] // 2 == jj[:, None])
    return m.astype(jnp.float32) / 4.0


def _cparams(n_axes):
    return pltpu.CompilerParams(
        dimension_semantics=("parallel",) * n_axes,
        vmem_limit_bytes=32 * 1024 * 1024)


# --------------------------------------------------------------------------- #
# Kernel 1: backbone stand-in — avg-pool s4 / s8 + 1x1 convs.  grid (B, H/8),
# each step reads 8 raw image rows (8W, 3) — input is never lane-padded.
# --------------------------------------------------------------------------- #
def _backbone_kernel(x_ref, a4_ref, a48_ref, wl_ref, bl_ref, wh_ref, bh_ref,
                     low_ref, high_ref):
    xb = x_ref[0].astype(jnp.bfloat16)                                    # (8W, C)
    p4 = jnp.dot(a4_ref[...], xb, preferred_element_type=jnp.float32)     # (W/2, C)
    p4b = p4.astype(jnp.bfloat16)
    p8 = jnp.dot(a48_ref[...], p4b, preferred_element_type=jnp.float32)   # (W/8, C)
    low = jnp.dot(p4b, wl_ref[...], preferred_element_type=jnp.float32) + bl_ref[...]
    high = jnp.dot(p8.astype(jnp.bfloat16), wh_ref[...],
                   preferred_element_type=jnp.float32) + bh_ref[...]
    low_ref[0] = jnp.maximum(low, 0.0)
    high_ref[0, 0] = jnp.maximum(high, 0.0)


def backbone(x, a4, a48, p, H, W):
    B, _, C = x.shape
    H4, W4, H8, W8 = H // 4, W // 4, H // 8, W // 8
    S4 = H4 * W4
    return pl.pallas_call(
        _backbone_kernel,
        out_shape=(jax.ShapeDtypeStruct((B, S4, CP), jnp.float32),
                   jax.ShapeDtypeStruct((B, H8, W8, CP), jnp.float32)),
        grid=(B, H // 8),
        in_specs=[
            pl.BlockSpec((1, 8 * W, C), lambda b, r: (b, r, 0)),
            pl.BlockSpec((2 * W4, 8 * W), lambda b, r: (0, 0)),
            pl.BlockSpec((W8, 2 * W4), lambda b, r: (0, 0)),
            pl.BlockSpec((C, CP), lambda b, r: (0, 0)),
            pl.BlockSpec((1, CP), lambda b, r: (0, 0)),
            pl.BlockSpec((C, CP), lambda b, r: (0, 0)),
            pl.BlockSpec((1, CP), lambda b, r: (0, 0)),
        ],
        out_specs=(pl.BlockSpec((1, 2 * W4, CP), lambda b, r: (b, r, 0)),
                   pl.BlockSpec((1, 1, W8, CP), lambda b, r: (b, r, 0, 0))),
        compiler_params=_cparams(2),
    )(x, a4, a48, p["w_low"], p["b_low"], p["w_high"], p["b_high"])


# --------------------------------------------------------------------------- #
# Kernel 2: SpatialGroupEnhance(groups=8) fused with the high-path projection
# (highF_sge @ w_d1_hi, commuted ahead of the upsample — both are linear).
# --------------------------------------------------------------------------- #
def _sge_project_kernel(h_ref, g_ref, gt_ref, w_ref, b_ref, wdh_ref, o_ref, *, n):
    hf = h_ref[0]                                              # (S8, CP) f32
    avg = jnp.mean(hf, axis=0, keepdims=True)                  # per-channel spatial mean
    xn = jnp.dot(hf * avg, g_ref[...], preferred_element_type=jnp.float32)
    mean_t = jnp.mean(xn, axis=0, keepdims=True)
    d = xn - mean_t
    var = jnp.sum(d * d, axis=0, keepdims=True) * (1.0 / max(n - 1, 1))  # unbiased
    t = d / (jnp.sqrt(var) + 1e-5)                             # eps added to std
    t = t * w_ref[...] + b_ref[...]                            # per-group scale / shift
    tc = jnp.dot(t, gt_ref[...], preferred_element_type=jnp.float32)
    gated = hf * jax.nn.sigmoid(tc)
    o_ref[0] = jnp.dot(gated.astype(jnp.bfloat16), wdh_ref[...],
                       preferred_element_type=jnp.float32)


def sge_project(highF, p):
    B, S8, _ = highF.shape
    return pl.pallas_call(
        functools.partial(_sge_project_kernel, n=S8),
        out_shape=jax.ShapeDtypeStruct((B, S8, CP), jnp.float32),
        grid=(B,),
        in_specs=[
            pl.BlockSpec((1, S8, CP), lambda b: (b, 0, 0)),
            pl.BlockSpec((CP, CP), lambda b: (0, 0)),
            pl.BlockSpec((CP, CP), lambda b: (0, 0)),
            pl.BlockSpec((1, CP), lambda b: (0, 0)),
            pl.BlockSpec((1, CP), lambda b: (0, 0)),
            pl.BlockSpec((CP, CP), lambda b: (0, 0)),
        ],
        out_specs=pl.BlockSpec((1, S8, CP), lambda b: (b, 0, 0)),
        compiler_params=_cparams(1),
    )(highF, p["g_mat"], p["gt_mat"], p["sge_w"], p["sge_b"], p["w_d1_hi"])


# --------------------------------------------------------------------------- #
# Kernels 3 + 4: separable bilinear upsample H/8,W/8 -> H/4,W/4 of the high
# path.  W axis per spatial row (grid (B, H/8)); H axis per batch on the free
# (H/8, W/4*128) HBM view.
# --------------------------------------------------------------------------- #
def _w_up_kernel(a_ref, uw_ref, o_ref):
    row = a_ref[0, 0].astype(jnp.bfloat16)                     # (W8, CP)
    o_ref[0, 0] = jnp.dot(uw_ref[...], row, preferred_element_type=jnp.float32)


def w_upsample(a_hi, uw2):
    B, H8, W8, _ = a_hi.shape
    W4 = uw2.shape[0]
    return pl.pallas_call(
        _w_up_kernel,
        out_shape=jax.ShapeDtypeStruct((B, H8, W4, CP), jnp.float32),
        grid=(B, H8),
        in_specs=[
            pl.BlockSpec((1, 1, W8, CP), lambda b, r: (b, r, 0, 0)),
            pl.BlockSpec((W4, W8), lambda b, r: (0, 0)),
        ],
        out_specs=pl.BlockSpec((1, 1, W4, CP), lambda b, r: (b, r, 0, 0)),
        compiler_params=_cparams(2),
    )(a_hi, uw2)


def _h_up_kernel(z_ref, uh_ref, o_ref):
    z = z_ref[0].astype(jnp.bfloat16)                          # (H8, W4*CP)
    o_ref[0] = jnp.dot(uh_ref[...], z, preferred_element_type=jnp.float32)


def h_upsample(z, uh2):
    B, H8, L = z.shape
    H4 = uh2.shape[0]
    return pl.pallas_call(
        _h_up_kernel,
        out_shape=jax.ShapeDtypeStruct((B, H4, L), jnp.float32),
        grid=(B,),
        in_specs=[
            pl.BlockSpec((1, H8, L), lambda b: (b, 0, 0)),
            pl.BlockSpec((H4, H8), lambda b: (0, 0)),
        ],
        out_specs=pl.BlockSpec((1, H4, L), lambda b: (b, 0, 0)),
        compiler_params=_cparams(1),
    )(z, uh2)


# --------------------------------------------------------------------------- #
# Kernel 5: decoder channel math + classifier.  concat([hu, lp]) @ w_d1 is the
# split sum hu@w_d1_hi (already folded in kernel 2) + lp@w_d1_lo.  The
# classifier output is produced transposed and narrow: (NCP=8, HW/16).
# --------------------------------------------------------------------------- #
def _head_kernel(hu_ref, low_ref, wlp_ref, blp_ref, wdl_ref, bd_ref,
                 wct_ref, bct_ref, o_ref):
    hu = hu_ref[0]                                             # (S4, CP) d1-space high path
    lo = low_ref[0].astype(jnp.bfloat16)
    lp = jnp.maximum(
        jnp.dot(lo, wlp_ref[...], preferred_element_type=jnp.float32) + blp_ref[...],
        0.0)
    d1 = jnp.maximum(
        hu + jnp.dot(lp.astype(jnp.bfloat16), wdl_ref[...],
                     preferred_element_type=jnp.float32) + bd_ref[...],
        0.0)
    logits_t = jax.lax.dot_general(
        wct_ref[...], d1.astype(jnp.bfloat16),
        dimension_numbers=(((1,), (1,)), ((), ())),
        preferred_element_type=jnp.float32)                    # (NCP, S4)
    o_ref[0] = logits_t + bct_ref[...]


def decoder_head(hu, lowF, p):
    B, S4, _ = hu.shape
    return pl.pallas_call(
        _head_kernel,
        out_shape=jax.ShapeDtypeStruct((B, NCP, S4), jnp.float32),
        grid=(B,),
        in_specs=[
            pl.BlockSpec((1, S4, CP), lambda b: (b, 0, 0)),
            pl.BlockSpec((1, S4, CP), lambda b: (b, 0, 0)),
            pl.BlockSpec((CP, CP), lambda b: (0, 0)),
            pl.BlockSpec((1, CP), lambda b: (0, 0)),
            pl.BlockSpec((CP, CP), lambda b: (0, 0)),
            pl.BlockSpec((1, CP), lambda b: (0, 0)),
            pl.BlockSpec((NCP, CP), lambda b: (0, 0)),
            pl.BlockSpec((NCP, 1), lambda b: (0, 0)),
        ],
        out_specs=pl.BlockSpec((1, NCP, S4), lambda b: (b, 0, 0)),
        compiler_params=_cparams(1),
    )(hu, lowF, p["w_lp"], p["b_lp"], p["w_d1_lo"], p["b_d1"],
      p["w_cls_t"], p["b_cls_t"])


# --------------------------------------------------------------------------- #
# Kernel 6: final bilinear upsample to input resolution, separable, computed
# per (batch, class) in class-major layout → output is already NCHW (padded).
# --------------------------------------------------------------------------- #
def _final_up_kernel(lt_ref, uh_ref, wwt_ref, o_ref):
    lt = lt_ref[0, 0].astype(jnp.bfloat16)                     # (H4, W4)
    s = jnp.dot(lt, wwt_ref[...], preferred_element_type=jnp.float32)      # (H4, W)
    o_ref[0, 0] = jnp.dot(uh_ref[...], s.astype(jnp.bfloat16),
                          preferred_element_type=jnp.float32)              # (H, W)


def final_upsample(logits_cm, uh4, uw4t):
    B, NC_, H4, W4 = logits_cm.shape
    H, W = uh4.shape[0], uw4t.shape[1]
    return pl.pallas_call(
        _final_up_kernel,
        out_shape=jax.ShapeDtypeStruct((B, NC_, H, W), jnp.float32),
        grid=(B, NC_),
        in_specs=[
            pl.BlockSpec((1, 1, H4, W4), lambda b, c: (b, c, 0, 0)),
            pl.BlockSpec((H, H4), lambda b, c: (0, 0)),
            pl.BlockSpec((W4, W), lambda b, c: (0, 0)),
        ],
        out_specs=pl.BlockSpec((1, 1, H, W), lambda b, c: (b, c, 0, 0)),
        compiler_params=_cparams(2),
    )(logits_cm, uh4, uw4t)


# --------------------------------------------------------------------------- #
# Parameters (lane-padded to CP, matmul weights stored in bf16, non-zero biases)
# --------------------------------------------------------------------------- #
def init_params(key, in_ch=3, num_classes=2, c_high=64, c_low=24, c_lp=48,
                c_d1=64, groups=8):
    ks = jax.random.split(key, 6)

    def lin(k, cin, cout, rows):
        kw, kb = jax.random.split(k)
        w = jnp.zeros((rows, CP), jnp.float32).at[:cin, :cout].set(
            0.05 * jax.random.normal(kw, (cin, cout), jnp.float32))
        b = jnp.zeros((1, CP), jnp.float32).at[0, :cout].set(
            0.05 * jax.random.normal(kb, (cout,), jnp.float32))
        return w.astype(jnp.bfloat16), b

    w_low, b_low = lin(ks[0], in_ch, c_low, in_ch)        # stand-in low-level features
    w_high, b_high = lin(ks[1], in_ch, c_high, in_ch)     # stand-in high-level features
    w_lp, b_lp = lin(ks[2], c_low, c_lp, CP)              # decoder low-level projection
    w_d1_hi, _ = lin(ks[3], c_high, c_d1, CP)             # fuse conv, high-path rows
    w_d1_lo, b_d1 = lin(ks[4], c_lp, c_d1, CP)            # fuse conv, low-path rows

    kcw, kcb = jax.random.split(ks[5])
    w_cls_t = jnp.zeros((NCP, CP), jnp.float32).at[:num_classes, :c_d1].set(
        0.05 * jax.random.normal(kcw, (num_classes, c_d1), jnp.float32)
    ).astype(jnp.bfloat16)
    b_cls_t = jnp.zeros((NCP, 1), jnp.float32).at[:num_classes, 0].set(
        0.05 * jax.random.normal(kcb, (num_classes,), jnp.float32))

    # SGE parameters: PyTorch init (weight zeros, bias ones), lane-padded.
    sge_w = jnp.zeros((1, CP), jnp.float32)
    sge_b = jnp.zeros((1, CP), jnp.float32).at[0, :groups].set(1.0)

    # one-hot channel->group / group->channel matrices (padded lanes inert).
    cpg = c_high // groups
    c_idx = jnp.arange(CP)
    grp_of_c = jnp.where(c_idx < c_high, c_idx // cpg, CP + 1)
    g_mat = (grp_of_c[:, None] == jnp.arange(CP)[None, :]).astype(jnp.float32)
    gt_mat = g_mat.T

    return dict(w_low=w_low, b_low=b_low, w_high=w_high, b_high=b_high,
                w_lp=w_lp, b_lp=b_lp, w_d1_hi=w_d1_hi, w_d1_lo=w_d1_lo,
                b_d1=b_d1, w_cls_t=w_cls_t, b_cls_t=b_cls_t,
                sge_w=sge_w, sge_b=sge_b, g_mat=g_mat, gt_mat=gt_mat)


# --------------------------------------------------------------------------- #
# AmRTSNet.forward — input NCHW, output NCHW logits at input resolution.
# Layout switches between kernels are free HBM reshapes (row-major compatible).
# --------------------------------------------------------------------------- #
def amrtsnet_forward(x_nchw, p, num_classes=2):
    B, C, H, W = x_nchw.shape
    assert H % 8 == 0 and W % 16 == 0
    assert num_classes <= NCP
    H4, W4, H8, W8 = H // 4, W // 4, H // 8, W // 8
    S4, S8 = H4 * W4, H8 * W8

    # single boundary relayout: NCHW -> channel-last (B, H*W, C); NOT lane-padded.
    x = jnp.transpose(x_nchw, (0, 2, 3, 1)).reshape(B, H * W, C).astype(jnp.float32)

    a4 = _block_pool4_matrix(W).astype(jnp.bfloat16)       # (W/2, 8W)
    a48 = _pool2_from_pool4_matrix(W).astype(jnp.bfloat16)  # (W/8, W/2)
    uw2 = _interp_matrix(W4, W8).astype(jnp.bfloat16)       # W/8 -> W/4
    uh2 = _interp_matrix(H4, H8).astype(jnp.bfloat16)       # H/8 -> H/4
    uh4 = _interp_matrix(H, H4).astype(jnp.bfloat16)        # H/4 -> H
    uw4t = _interp_matrix(W, W4).T.astype(jnp.bfloat16)     # (W/4, W)

    lowF, highF = backbone(x, a4, a48, p, H, W)             # (B,S4,CP), (B,H8,W8,CP)
    a_hi = sge_project(highF.reshape(B, S8, CP), p)         # SGE + w_d1_hi   (B,S8,CP)
    z = w_upsample(a_hi.reshape(B, H8, W8, CP), uw2)        # (B,H8,W4,CP)
    hu = h_upsample(z.reshape(B, H8, W4 * CP), uh2)         # (B,H4,W4*CP)
    logits_t = decoder_head(hu.reshape(B, S4, CP), lowF, p)  # (B,NCP,S4)
    out = final_upsample(logits_t.reshape(B, NCP, H4, W4), uh4, uw4t)  # (B,NCP,H,W)
    return out[:, :num_classes]                              # NCHW, no transpose


if __name__ == "__main__":
    key = jax.random.PRNGKey(0)
    k_x, k_p = jax.random.split(key)
    x = jax.random.normal(k_x, (2, 3, 16, 16), dtype=jnp.float32)  # NCHW like PyTorch
    params = init_params(k_p, in_ch=3, num_classes=2)

    fwd = jax.jit(functools.partial(amrtsnet_forward, num_classes=2))
    out = jax.block_until_ready(fwd(x, params))

    assert out.shape == (2, 2, 16, 16), out.shape
    assert bool(jnp.all(jnp.isfinite(out)))
    print("KERNEL_OK")
</pallas_src>

<mosaic_0001>
module attributes {stable_mosaic.version = 11 : i64} {
  func.func @_backbone_kernel(%arg0: i32, %arg1: i32, %arg2: memref<1x128x3xf32, #tpu.memory_space<vmem>>, %arg3: memref<8x128xbf16, #tpu.memory_space<vmem>>, %arg4: memref<2x8xbf16, #tpu.memory_space<vmem>>, %arg5: memref<3x128xbf16, #tpu.memory_space<vmem>>, %arg6: memref<1x128xf32, #tpu.memory_space<vmem>>, %arg7: memref<3x128xbf16, #tpu.memory_space<vmem>>, %arg8: memref<1x128xf32, #tpu.memory_space<vmem>>, %arg9: memref<1x8x128xf32, #tpu.memory_space<vmem>>, %arg10: memref<1x1x2x128xf32, #tpu.memory_space<vmem>>) attributes {dimension_semantics = [#tpu.dimension_semantics<parallel>, #tpu.dimension_semantics<parallel>], iteration_bounds = array<i64: 2, 2>, scalar_prefetch = 0 : i64, scratch_operands = 0 : i64, tpu.core_type = #tpu.core_type<tc>, window_params = [{transform_indices = @transform_0, window_bounds = array<i64: 1, 128, 3>}, {pipeline_mode = #tpu.pipeline_mode<synchronous>, transform_indices = @transform_1, window_bounds = array<i64: 8, 128>}, {pipeline_mode = #tpu.pipeline_mode<synchronous>, transform_indices = @transform_2, window_bounds = array<i64: 2, 8>}, {pipeline_mode = #tpu.pipeline_mode<synchronous>, transform_indices = @transform_3, window_bounds = array<i64: 3, 128>}, {pipeline_mode = #tpu.pipeline_mode<synchronous>, transform_indices = @transform_4, window_bounds = array<i64: 1, 128>}, {pipeline_mode = #tpu.pipeline_mode<synchronous>, transform_indices = @transform_5, window_bounds = array<i64: 3, 128>}, {pipeline_mode = #tpu.pipeline_mode<synchronous>, transform_indices = @transform_6, window_bounds = array<i64: 1, 128>}, {transform_indices = @transform_7, window_bounds = array<i64: 1, 8, 128>}, {transform_indices = @transform_8, window_bounds = array<i64: 1, 1, 2, 128>}]} {
    %c0 = arith.constant 0 : index
    %c0_0 = arith.constant 0 : index
    %c0_1 = arith.constant 0 : index
    %0 = vector.load %arg2[%c0, %c0_0, %c0_1] : memref<1x128x3xf32, #tpu.memory_space<vmem>>, vector<1x128x3xf32>
    %1 = vector.shape_cast %0 : vector<1x128x3xf32> to vector<128x3xf32>
    %2 = arith.truncf %1 : vector<128x3xf32> to vector<128x3xbf16>
    %c0_2 = arith.constant 0 : index
    %c0_3 = arith.constant 0 : index
    %3 = vector.load %arg3[%c0_2, %c0_3] : memref<8x128xbf16, #tpu.memory_space<vmem>>, vector<8x128xbf16>
    %cst = arith.constant dense<0.000000e+00> : vector<8x3xf32>
    %4 = tpu.matmul %3, %2, %cst {dimension_numbers = #tpu.dot_dimension_numbers<[1], [0], [0], [1], [0, 0, 1, 1], [], []>} : vector<8x128xbf16>, vector<128x3xbf16>, vector<8x3xf32> -> vector<8x3xf32>
    %5 = arith.truncf %4 : vector<8x3xf32> to vector<8x3xbf16>
    %c0_4 = arith.constant 0 : index
    %c0_5 = arith.constant 0 : index
    %6 = vector.load %arg4[%c0_4, %c0_5] : memref<2x8xbf16, #tpu.memory_space<vmem>>, vector<2x8xbf16>
    %cst_6 = arith.constant dense<0.000000e+00> : vector<2x3xf32>
    %7 = tpu.matmul %6, %5, %cst_6 {dimension_numbers = #tpu.dot_dimension_numbers<[1], [0], [0], [1], [0, 0, 1, 1], [], []>} : vector<2x8xbf16>, vector<8x3xbf16>, vector<2x3xf32> -> vector<2x3xf32>
    %c0_7 = arith.constant 0 : index
    %c0_8 = arith.constant 0 : index
    %8 = vector.load %arg5[%c0_7, %c0_8] : memref<3x128xbf16, #tpu.memory_space<vmem>>, vector<3x128xbf16>
    %cst_9 = arith.constant dense<0.000000e+00> : vector<8x128xf32>
    %9 = tpu.matmul %5, %8, %cst_9 {dimension_numbers = #tpu.dot_dimension_numbers<[1], [0], [0], [1], [0, 0, 1, 1], [], []>} : vector<8x3xbf16>, vector<3x128xbf16>, vector<8x128xf32> -> vector<8x128xf32>
    %c0_10 = arith.constant 0 : index
    %c0_11 = arith.constant 0 : index
    %10 = vector.load %arg6[%c0_10, %c0_11] : memref<1x128xf32, #tpu.memory_space<vmem>>, vector<1x128xf32>
    %11 = vector.broadcast %10 : vector<1x128xf32> to vector<8x128xf32>
    %12 = arith.addf %9, %11 : vector<8x128xf32>
    %13 = arith.truncf %7 : vector<2x3xf32> to vector<2x3xbf16>
    %c0_12 = arith.constant 0 : index
    %c0_13 = arith.constant 0 : index
    %14 = vector.load %arg7[%c0_12, %c0_13] : memref<3x128xbf16, #tpu.memory_space<vmem>>, vector<3x128xbf16>
    %cst_14 = arith.constant dense<0.000000e+00> : vector<2x128xf32>
    %15 = tpu.matmul %13, %14, %cst_14 {dimension_numbers = #tpu.dot_dimension_numbers<[1], [0], [0], [1], [0, 0, 1, 1], [], []>} : vector<2x3xbf16>, vector<3x128xbf16>, vector<2x128xf32> -> vector<2x128xf32>
    %c0_15 = arith.constant 0 : index
    %c0_16 = arith.constant 0 : index
    %16 = vector.load %arg8[%c0_15, %c0_16] : memref<1x128xf32, #tpu.memory_space<vmem>>, vector<1x128xf32>
    %17 = vector.broadcast %16 : vector<1x128xf32> to vector<2x128xf32>
    %18 = arith.addf %15, %17 : vector<2x128xf32>
    %cst_17 = arith.constant 0.000000e+00 : f32
    %19 = vector.broadcast %cst_17 : f32 to vector<8x128xf32>
    %20 = arith.maximumf %12, %19 : vector<8x128xf32>
    %c0_18 = arith.constant 0 : index
    %c0_19 = arith.constant 0 : index
    %c0_20 = arith.constant 0 : index
    %21 = vector.load %arg9[%c0_18, %c0_19, %c0_20] : memref<1x8x128xf32, #tpu.memory_space<vmem>>, vector<1x8x128xf32>
    %22 = vector.shape_cast %21 : vector<1x8x128xf32> to vector<8x128xf32>
    %23 = vector.shape_cast %20 : vector<8x128xf32> to vector<1x8x128xf32>
    tpu.vector_store %arg9[%c0_18, %c0_19, %c0_20], %23 {strides = array<i32>} : memref<1x8x128xf32, #tpu.memory_space<vmem>>, vector<1x8x128xf32>,
    %cst_21 = arith.constant 0.000000e+00 : f32
    %24 = vector.broadcast %cst_21 : f32 to vector<2x128xf32>
    %25 = arith.maximumf %18, %24 : vector<2x128xf32>
    %c0_22 = arith.constant 0 : index
    %c0_23 = arith.constant 0 : index
    %c0_24 = arith.constant 0 : index
    %c0_25 = arith.constant 0 : index
    %26 = vector.load %arg10[%c0_22, %c0_23, %c0_24, %c0_25] : memref<1x1x2x128xf32, #tpu.memory_space<vmem>>, vector<1x1x2x128xf32>
    %27 = vector.shape_cast %26 : vector<1x1x2x128xf32> to vector<2x128xf32>
    %28 = vector.shape_cast %25 : vector<2x128xf32> to vector<1x1x2x128xf32>
    tpu.vector_store %arg10[%c0_22, %c0_23, %c0_24, %c0_25], %28 {strides = array<i32>} : memref<1x1x2x128xf32, #tpu.memory_space<vmem>>, vector<1x1x2x128xf32>,
    return
  }
  func.func @transform_0(%arg0: i32, %arg1: i32) -> (i32, i32, i32) {
    %c0_i32 = arith.constant 0 : i32
    %c0_i32_0 = arith.constant 0 : i32
    return %arg0, %arg1, %c0_i32 : i32, i32, i32
  }
  func.func @transform_1(%arg0: i32, %arg1: i32) -> (i32, i32) {
    %c0_i32 = arith.constant 0 : i32
    %c0_i32_0 = arith.constant 0 : i32
    %c0_i32_1 = arith.constant 0 : i32
    return %c0_i32, %c0_i32_0 : i32, i32
  }
  func.func @transform_2(%arg0: i32, %arg1: i32) -> (i32, i32) {
    %c0_i32 = arith.constant 0 : i32
    %c0_i32_0 = arith.constant 0 : i32
    %c0_i32_1 = arith.constant 0 : i32
    return %c0_i32, %c0_i32_0 : i32, i32
  }
  func.func @transform_3(%arg0: i32, %arg1: i32) -> (i32, i32) {
    %c0_i32 = arith.constant 0 : i32
    %c0_i32_0 = arith.constant 0 : i32
    %c0_i32_1 = arith.constant 0 : i32
    return %c0_i32, %c0_i32_0 : i32, i32
  }
  func.func @transform_4(%arg0: i32, %arg1: i32) -> (i32, i32) {
    %c0_i32 = arith.constant 0 : i32
    %c0_i32_0 = arith.constant 0 : i32
    %c0_i32_1 = arith.constant 0 : i32
    return %c0_i32, %c0_i32_0 : i32, i32
  }
  func.func @transform_5(%arg0: i32, %arg1: i32) -> (i32, i32) {
    %c0_i32 = arith.constant 0 : i32
    %c0_i32_0 = arith.constant 0 : i32
    %c0_i32_1 = arith.constant 0 : i32
    return %c0_i32, %c0_i32_0 : i32, i32
  }
  func.func @transform_6(%arg0: i32, %arg1: i32) -> (i32, i32) {
    %c0_i32 = arith.constant 0 : i32
    %c0_i32_0 = arith.constant 0 : i32
    %c0_i32_1 = arith.constant 0 : i32
    return %c0_i32, %c0_i32_0 : i32, i32
  }
  func.func @transform_7(%arg0: i32, %arg1: i32) -> (i32, i32, i32) {
    %c0_i32 = arith.constant 0 : i32
    %c0_i32_0 = arith.constant 0 : i32
    return %arg0, %arg1, %c0_i32 : i32, i32, i32
  }
  func.func @transform_8(%arg0: i32, %arg1: i32) -> (i32, i32, i32, i32) {
    %c0_i32 = arith.constant 0 : i32
    %c0_i32_0 = arith.constant 0 : i32
    %c0_i32_1 = arith.constant 0 : i32
    return %arg0, %arg1, %c0_i32, %c0_i32_0 : i32, i32, i32, i32
  }
}

module attributes {stable_mosaic.version = 11 : i64} {
  func.func @_sge_project_kernel(%arg0: i32, %arg1: memref<1x4x128xf32, #tpu.memory_space<vmem>>, %arg2: memref<128x128xf32, #tpu.memory_space<vmem>>, %arg3: memref<128x128xf32, #tpu.memory_space<vmem>>, %arg4: memref<1x128xf32, #tpu.memory_space<vmem>>, %arg5: memref<1x128xf32, #tpu.memory_space<vmem>>, %arg6: memref<128x128xbf16, #tpu.memory_space<vmem>>, %arg7: memref<1x4x128xf32, #tpu.memory_space<vmem>>) attributes {dimension_semantics = [#tpu.dimension_semantics<parallel>], iteration_bounds = array<i64: 2>, scalar_prefetch = 0 : i64, scratch_operands = 0 : i64, tpu.core_type = #tpu.core_type<tc>, window_params = [{transform_indices = @transform_0, window_bounds = array<i64: 1, 4, 128>}, {pipeline_mode = #tpu.pipeline_mode<synchronous>, transform_indices = @transform_1, window_bounds = array<i64: 128, 128>}, {pipeline_mode = #tpu.pipeline_mode<synchronous>, transform_indices = @transform_2, window_bounds = array<i64: 128, 128>}, {pipeline_mode = #tpu.pipeline_mode<synchronous>, transform_indices = @transform_3, window_bounds = array<i64: 1, 128>}, {pipeline_mode = #tpu.pipeline_mode<synchronous>, transform_indices = @transform_4, window_bounds = array<i64: 1, 128>}, {pipeline_mode = #tpu.pipeline_mode<synchronous>, transform_indices = @transform_5, window_bounds = array<i64: 128, 128>}, {transform_indices = @transform_6, window_bounds = array<i64: 1, 4, 128>}]} {
    %c0 = arith.constant 0 : index
    %c0_0 = arith.constant 0 : index
    %c0_1 = arith.constant 0 : index
    %0 = vector.load %arg1[%c0, %c0_0, %c0_1] : memref<1x4x128xf32, #tpu.memory_space<vmem>>, vector<1x4x128xf32>
    %1 = vector.shape_cast %0 : vector<1x4x128xf32> to vector<4x128xf32>
    %cst = arith.constant dense<0.000000e+00> : vector<128xf32>
    %2 = vector.multi_reduction <add>, %1, %cst [0] : vector<4x128xf32> to vector<128xf32>
    %3 = vector.shape_cast %2 : vector<128xf32> to vector<1x128xf32>
    %cst_2 = arith.constant 4.000000e+00 : f32
    %4 = vector.broadcast %cst_2 : f32 to vector<1x128xf32>
    %5 = arith.divf %3, %4 : vector<1x128xf32>
    %6 = vector.broadcast %5 : vector<1x128xf32> to vector<4x128xf32>
    %7 = arith.mulf %1, %6 : vector<4x128xf32>
    %c0_3 = arith.constant 0 : index
    %c0_4 = arith.constant 0 : index
    %8 = vector.load %arg2[%c0_3, %c0_4] : memref<128x128xf32, #tpu.memory_space<vmem>>, vector<128x128xf32>
    %cst_5 = arith.constant dense<0.000000e+00> : vector<4x128xf32>
    %9 = tpu.matmul %7, %8, %cst_5 {dimension_numbers = #tpu.dot_dimension_numbers<[1], [0], [0], [1], [0, 0, 1, 1], [], []>} : vector<4x128xf32>, vector<128x128xf32>, vector<4x128xf32> -> vector<4x128xf32>
    %cst_6 = arith.constant dense<0.000000e+00> : vector<128xf32>
    %10 = vector.multi_reduction <add>, %9, %cst_6 [0] : vector<4x128xf32> to vector<128xf32>
    %11 = vector.shape_cast %10 : vector<128xf32> to vector<1x128xf32>
    %cst_7 = arith.constant 4.000000e+00 : f32
    %12 = vector.broadcast %cst_7 : f32 to vector<1x128xf32>
    %13 = arith.divf %11, %12 : vector<1x128xf32>
    %14 = vector.broadcast %13 : vector<1x128xf32> to vector<4x128xf32>
    %15 = arith.subf %9, %14 : vector<4x128xf32>
    %16 = arith.mulf %15, %15 : vector<4x128xf32>
    %cst_8 = arith.constant dense<0.000000e+00> : vector<128xf32>
    %17 = vector.multi_reduction <add>, %16, %cst_8 [0] : vector<4x128xf32> to vector<128xf32>
    %18 = vector.shape_cast %17 : vector<128xf32> to vector<1x128xf32>
    %cst_9 = arith.constant 0.333333343 : f32
    %19 = vector.broadcast %cst_9 : f32 to vector<1x128xf32>
    %20 = arith.mulf %18, %19 : vector<1x128xf32>
    %21 = math.sqrt %20 : vector<1x128xf32>
    %cst_10 = arith.constant 9.99999974E-6 : f32
    %22 = vector.broadcast %cst_10 : f32 to vector<1x128xf32>
    %23 = arith.addf %21, %22 : vector<1x128xf32>
    %24 = vector.broadcast %23 : vector<1x128xf32> to vector<4x128xf32>
    %25 = arith.divf %15, %24 : vector<4x128xf32>
    %c0_11 = arith.constant 0 : index
    %c0_12 = arith.constant 0 : index
    %26 = vector.load %arg4[%c0_11, %c0_12] : memref<1x128xf32, #tpu.memory_space<vmem>>, vector<1x128xf32>
    %27 = vector.broadcast %26 : vector<1x128xf32> to vector<4x128xf32>
    %28 = arith.mulf %25, %27 : vector<4x128xf32>
    %c0_13 = arith.constant 0 : index
    %c0_14 = arith.constant 0 : index
    %29 = vector.load %arg5[%c0_13, %c0_14] : memref<1x128xf32, #tpu.memory_space<vmem>>, vector<1x128xf32>
    %30 = vector.broadcast %29 : vector<1x128xf32> to vector<4x128xf32>
    %31 = arith.addf %28, %30 : vector<4x128xf32>
    %c0_15 = arith.constant 0 : index
    %c0_16 = arith.constant 0 : index
    %32 = vector.load %arg3[%c0_15, %c0_16] : memref<128x128xf32, #tpu.memory_space<vmem>>, vector<128x128xf32>
    %cst_17 = arith.constant dense<0.000000e+00> : vector<4x128xf32>
    %33 = tpu.matmul %31, %32, %cst_17 {dimension_numbers = #tpu.dot_dimension_numbers<[1], [0], [0], [1], [0, 0, 1, 1], [], []>} : vector<4x128xf32>, vector<128x128xf32>, vector<4x128xf32> -> vector<4x128xf32>
    %34 = arith.negf %33 : vector<4x128xf32>
    %35 = math.exp %34 : vector<4x128xf32>
    %cst_18 = arith.constant 1.000000e+00 : f32
    %36 = vector.broadcast %cst_18 : f32 to vector<4x128xf32>
    %37 = arith.addf %36, %35 : vector<4x128xf32>
    %38 = arith.divf %36, %37 : vector<4x128xf32>
    %39 = arith.mulf %1, %38 : vector<4x128xf32>
    %40 = arith.truncf %39 : vector<4x128xf32> to vector<4x128xbf16>
    %c0_19 = arith.constant 0 : index
    %c0_20 = arith.constant 0 : index
    %41 = vector.load %arg6[%c0_19, %c0_20] : memref<128x128xbf16, #tpu.memory_space<vmem>>, vector<128x128xbf16>
    %cst_21 = arith.constant dense<0.000000e+00> : vector<4x128xf32>
    %42 = tpu.matmul %40, %41, %cst_21 {dimension_numbers = #tpu.dot_dimension_numbers<[1], [0], [0], [1], [0, 0, 1, 1], [], []>} : vector<4x128xbf16>, vector<128x128xbf16>, vector<4x128xf32> -> vector<4x128xf32>
    %c0_22 = arith.constant 0 : index
    %c0_23 = arith.constant 0 : index
    %c0_24 = arith.constant 0 : index
    %43 = vector.load %arg7[%c0_22, %c0_23, %c0_24] : memref<1x4x128xf32, #tpu.memory_space<vmem>>, vector<1x4x128xf32>
    %44 = vector.shape_cast %43 : vector<1x4x128xf32> to vector<4x128xf32>
    %45 = vector.shape_cast %42 : vector<4x128xf32> to vector<1x4x128xf32>
    tpu.vector_store %arg7[%c0_22, %c0_23, %c0_24], %45 {strides = array<i32>} : memref<1x4x128xf32, #tpu.memory_space<vmem>>, vector<1x4x128xf32>,
    return
  }
  func.func @transform_0(%arg0: i32) -> (i32, i32, i32) {
    %c0_i32 = arith.constant 0 : i32
    %c0_i32_0 = arith.constant 0 : i32
    %c0_i32_1 = arith.constant 0 : i32
    return %arg0, %c0_i32, %c0_i32_0 : i32, i32, i32
  }
  func.func @transform_1(%arg0: i32) -> (i32, i32) {
    %c0_i32 = arith.constant 0 : i32
    %c0_i32_0 = arith.constant 0 : i32
    %c0_i32_1 = arith.constant 0 : i32
    return %c0_i32, %c0_i32_0 : i32, i32
  }
  func.func @transform_2(%arg0: i32) -> (i32, i32) {
    %c0_i32 = arith.constant 0 : i32
    %c0_i32_0 = arith.constant 0 : i32
    %c0_i32_1 = arith.constant 0 : i32
    return %c0_i32, %c0_i32_0 : i32, i32
  }
  func.func @transform_3(%arg0: i32) -> (i32, i32) {
    %c0_i32 = arith.constant 0 : i32
    %c0_i32_0 = arith.constant 0 : i32
    %c0_i32_1 = arith.constant 0 : i32
    return %c0_i32, %c0_i32_0 : i32, i32
  }
  func.func @transform_4(%arg0: i32) -> (i32, i32) {
    %c0_i32 = arith.constant 0 : i32
    %c0_i32_0 = arith.constant 0 : i32
    %c0_i32_1 = arith.constant 0 : i32
    return %c0_i32, %c0_i32_0 : i32, i32
  }
  func.func @transform_5(%arg0: i32) -> (i32, i32) {
    %c0_i32 = arith.constant 0 : i32
    %c0_i32_0 = arith.constant 0 : i32
    %c0_i32_1 = arith.constant 0 : i32
    return %c0_i32, %c0_i32_0 : i32, i32
  }
  func.func @transform_6(%arg0: i32) -> (i32, i32, i32) {
    %c0_i32 = arith.constant 0 : i32
    %c0_i32_0 = arith.constant 0 : i32
    %c0_i32_1 = arith.constant 0 : i32
    return %arg0, %c0_i32, %c0_i32_0 : i32, i32, i32
  }
}

module attributes {stable_mosaic.version = 11 : i64} {
  func.func @_w_up_kernel(%arg0: i32, %arg1: i32, %arg2: memref<1x1x2x128xf32, #tpu.memory_space<vmem>>, %arg3: memref<4x2xbf16, #tpu.memory_space<vmem>>, %arg4: memref<1x1x4x128xf32, #tpu.memory_space<vmem>>) attributes {dimension_semantics = [#tpu.dimension_semantics<parallel>, #tpu.dimension_semantics<parallel>], iteration_bounds = array<i64: 2, 2>, scalar_prefetch = 0 : i64, scratch_operands = 0 : i64, tpu.core_type = #tpu.core_type<tc>, window_params = [{transform_indices = @transform_0, window_bounds = array<i64: 1, 1, 2, 128>}, {pipeline_mode = #tpu.pipeline_mode<synchronous>, transform_indices = @transform_1, window_bounds = array<i64: 4, 2>}, {transform_indices = @transform_2, window_bounds = array<i64: 1, 1, 4, 128>}]} {
    %c0 = arith.constant 0 : index
    %c0_0 = arith.constant 0 : index
    %c0_1 = arith.constant 0 : index
    %c0_2 = arith.constant 0 : index
    %0 = vector.load %arg2[%c0, %c0_0, %c0_1, %c0_2] : memref<1x1x2x128xf32, #tpu.memory_space<vmem>>, vector<1x1x2x128xf32>
    %1 = vector.shape_cast %0 : vector<1x1x2x128xf32> to vector<2x128xf32>
    %2 = arith.truncf %1 : vector<2x128xf32> to vector<2x128xbf16>
    %c0_3 = arith.constant 0 : index
    %c0_4 = arith.constant 0 : index
    %3 = vector.load %arg3[%c0_3, %c0_4] : memref<4x2xbf16, #tpu.memory_space<vmem>>, vector<4x2xbf16>
    %cst = arith.constant dense<0.000000e+00> : vector<4x128xf32>
    %4 = tpu.matmul %3, %2, %cst {dimension_numbers = #tpu.dot_dimension_numbers<[1], [0], [0], [1], [0, 0, 1, 1], [], []>} : vector<4x2xbf16>, vector<2x128xbf16>, vector<4x128xf32> -> vector<4x128xf32>
    %c0_5 = arith.constant 0 : index
    %c0_6 = arith.constant 0 : index
    %c0_7 = arith.constant 0 : index
    %c0_8 = arith.constant 0 : index
    %5 = vector.load %arg4[%c0_5, %c0_6, %c0_7, %c0_8] : memref<1x1x4x128xf32, #tpu.memory_space<vmem>>, vector<1x1x4x128xf32>
    %6 = vector.shape_cast %5 : vector<1x1x4x128xf32> to vector<4x128xf32>
    %7 = vector.shape_cast %4 : vector<4x128xf32> to vector<1x1x4x128xf32>
    tpu.vector_store %arg4[%c0_5, %c0_6, %c0_7, %c0_8], %7 {strides = array<i32>} : memref<1x1x4x128xf32, #tpu.memory_space<vmem>>, vector<1x1x4x128xf32>,
    return
  }
  func.func @transform_0(%arg0: i32, %arg1: i32) -> (i32, i32, i32, i32) {
    %c0_i32 = arith.constant 0 : i32
    %c0_i32_0 = arith.constant 0 : i32
    %c0_i32_1 = arith.constant 0 : i32
    return %arg0, %arg1, %c0_i32, %c0_i32_0 : i32, i32, i32, i32
  }
  func.func @transform_1(%arg0: i32, %arg1: i32) -> (i32, i32) {
    %c0_i32 = arith.constant 0 : i32
    %c0_i32_0 = arith.constant 0 : i32
    %c0_i32_1 = arith.constant 0 : i32
    return %c0_i32, %c0_i32_0 : i32, i32
  }
  func.func @transform_2(%arg0: i32, %arg1: i32) -> (i32, i32, i32, i32) {
    %c0_i32 = arith.constant 0 : i32
    %c0_i32_0 = arith.constant 0 : i32
    %c0_i32_1 = arith.constant 0 : i32
    return %arg0, %arg1, %c0_i32, %c0_i32_0 : i32, i32, i32, i32
  }
}

module attributes {stable_mosaic.version = 11 : i64} {
  func.func @_h_up_kernel(%arg0: i32, %arg1: memref<1x2x512xf32, #tpu.memory_space<vmem>>, %arg2: memref<4x2xbf16, #tpu.memory_space<vmem>>, %arg3: memref<1x4x512xf32, #tpu.memory_space<vmem>>) attributes {dimension_semantics = [#tpu.dimension_semantics<parallel>], iteration_bounds = array<i64: 2>, scalar_prefetch = 0 : i64, scratch_operands = 0 : i64, tpu.core_type = #tpu.core_type<tc>, window_params = [{transform_indices = @transform_0, window_bounds = array<i64: 1, 2, 512>}, {pipeline_mode = #tpu.pipeline_mode<synchronous>, transform_indices = @transform_1, window_bounds = array<i64: 4, 2>}, {transform_indices = @transform_2, window_bounds = array<i64: 1, 4, 512>}]} {
    %c0 = arith.constant 0 : index
    %c0_0 = arith.constant 0 : index
    %c0_1 = arith.constant 0 : index
    %0 = vector.load %arg1[%c0, %c0_0, %c0_1] : memref<1x2x512xf32, #tpu.memory_space<vmem>>, vector<1x2x512xf32>
    %1 = vector.shape_cast %0 : vector<1x2x512xf32> to vector<2x512xf32>
    %2 = arith.truncf %1 : vector<2x512xf32> to vector<2x512xbf16>
    %c0_2 = arith.constant 0 : index
    %c0_3 = arith.constant 0 : index
    %3 = vector.load %arg2[%c0_2, %c0_3] : memref<4x2xbf16, #tpu.memory_space<vmem>>, vector<4x2xbf16>
    %cst = arith.constant dense<0.000000e+00> : vector<4x512xf32>
    %4 = tpu.matmul %3, %2, %cst {dimension_numbers = #tpu.dot_dimension_numbers<[1], [0], [0], [1], [0, 0, 1, 1], [], []>} : vector<4x2xbf16>, vector<2x512xbf16>, vector<4x512xf32> -> vector<4x512xf32>
    %c0_4 = arith.constant 0 : index
    %c0_5 = arith.constant 0 : index
    %c0_6 = arith.constant 0 : index
    %5 = vector.load %arg3[%c0_4, %c0_5, %c0_6] : memref<1x4x512xf32, #tpu.memory_space<vmem>>, vector<1x4x512xf32>
    %6 = vector.shape_cast %5 : vector<1x4x512xf32> to vector<4x512xf32>
    %7 = vector.shape_cast %4 : vector<4x512xf32> to vector<1x4x512xf32>
    tpu.vector_store %arg3[%c0_4, %c0_5, %c0_6], %7 {strides = array<i32>} : memref<1x4x512xf32, #tpu.memory_space<vmem>>, vector<1x4x512xf32>,
    return
  }
  func.func @transform_0(%arg0: i32) -> (i32, i32, i32) {
    %c0_i32 = arith.constant 0 : i32
    %c0_i32_0 = arith.constant 0 : i32
    %c0_i32_1 = arith.constant 0 : i32
    return %arg0, %c0_i32, %c0_i32_0 : i32, i32, i32
  }
  func.func @transform_1(%arg0: i32) -> (i32, i32) {
    %c0_i32 = arith.constant 0 : i32
    %c0_i32_0 = arith.constant 0 : i32
    %c0_i32_1 = arith.constant 0 : i32
    return %c0_i32, %c0_i32_0 : i32, i32
  }
  func.func @transform_2(%arg0: i32) -> (i32, i32, i32) {
    %c0_i32 = arith.constant 0 : i32
    %c0_i32_0 = arith.constant 0 : i32
    %c0_i32_1 = arith.constant 0 : i32
    return %arg0, %c0_i32, %c0_i32_0 : i32, i32, i32
  }
}

module attributes {stable_mosaic.version = 11 : i64} {
  func.func @_final_up_kernel(%arg0: i32, %arg1: i32, %arg2: memref<1x1x4x4xf32, #tpu.memory_space<vmem>>, %arg3: memref<16x4xbf16, #tpu.memory_space<vmem>>, %arg4: memref<4x16xbf16, #tpu.memory_space<vmem>>, %arg5: memref<1x1x16x16xf32, #tpu.memory_space<vmem>>) attributes {dimension_semantics = [#tpu.dimension_semantics<parallel>, #tpu.dimension_semantics<parallel>], iteration_bounds = array<i64: 2, 8>, scalar_prefetch = 0 : i64, scratch_operands = 0 : i64, tpu.core_type = #tpu.core_type<tc>, window_params = [{transform_indices = @transform_0, window_bounds = array<i64: 1, 1, 4, 4>}, {pipeline_mode = #tpu.pipeline_mode<synchronous>, transform_indices = @transform_1, window_bounds = array<i64: 16, 4>}, {pipeline_mode = #tpu.pipeline_mode<synchronous>, transform_indices = @transform_2, window_bounds = array<i64: 4, 16>}, {transform_indices = @transform_3, window_bounds = array<i64: 1, 1, 16, 16>}]} {
    %c0 = arith.constant 0 : index
    %c0_0 = arith.constant 0 : index
    %c0_1 = arith.constant 0 : index
    %c0_2 = arith.constant 0 : index
    %0 = vector.load %arg2[%c0, %c0_0, %c0_1, %c0_2] : memref<1x1x4x4xf32, #tpu.memory_space<vmem>>, vector<1x1x4x4xf32>
    %1 = vector.shape_cast %0 : vector<1x1x4x4xf32> to vector<4x4xf32>
    %2 = arith.truncf %1 : vector<4x4xf32> to vector<4x4xbf16>
    %c0_3 = arith.constant 0 : index
    %c0_4 = arith.constant 0 : index
    %3 = vector.load %arg4[%c0_3, %c0_4] : memref<4x16xbf16, #tpu.memory_space<vmem>>, vector<4x16xbf16>
    %cst = arith.constant dense<0.000000e+00> : vector<4x16xf32>
    %4 = tpu.matmul %2, %3, %cst {dimension_numbers = #tpu.dot_dimension_numbers<[1], [0], [0], [1], [0, 0, 1, 1], [], []>} : vector<4x4xbf16>, vector<4x16xbf16>, vector<4x16xf32> -> vector<4x16xf32>
    %c0_5 = arith.constant 0 : index
    %c0_6 = arith.constant 0 : index
    %5 = vector.load %arg3[%c0_5, %c0_6] : memref<16x4xbf16, #tpu.memory_space<vmem>>, vector<16x4xbf16>
    %6 = arith.truncf %4 : vector<4x16xf32> to vector<4x16xbf16>
    %cst_7 = arith.constant dense<0.000000e+00> : vector<16x16xf32>
    %7 = tpu.matmul %5, %6, %cst_7 {dimension_numbers = #tpu.dot_dimension_numbers<[1], [0], [0], [1], [0, 0, 1, 1], [], []>} : vector<16x4xbf16>, vector<4x16xbf16>, vector<16x16xf32> -> vector<16x16xf32>
    %c0_8 = arith.constant 0 : index
    %c0_9 = arith.constant 0 : index
    %c0_10 = arith.constant 0 : index
    %c0_11 = arith.constant 0 : index
    %8 = vector.load %arg5[%c0_8, %c0_9, %c0_10, %c0_11] : memref<1x1x16x16xf32, #tpu.memory_space<vmem>>, vector<1x1x16x16xf32>
    %9 = vector.shape_cast %8 : vector<1x1x16x16xf32> to vector<16x16xf32>
    %10 = vector.shape_cast %7 : vector<16x16xf32> to vector<1x1x16x16xf32>
    tpu.vector_store %arg5[%c0_8, %c0_9, %c0_10, %c0_11], %10 {strides = array<i32>} : memref<1x1x16x16xf32, #tpu.memory_space<vmem>>, vector<1x1x16x16xf32>,
    return
  }
  func.func @transform_0(%arg0: i32, %arg1: i32) -> (i32, i32, i32, i32) {
    %c0_i32 = arith.constant 0 : i32
    %c0_i32_0 = arith.constant 0 : i32
    %c0_i32_1 = arith.constant 0 : i32
    return %arg0, %arg1, %c0_i32, %c0_i32_0 : i32, i32, i32, i32
  }
  func.func @transform_1(%arg0: i32, %arg1: i32) -> (i32, i32) {
    %c0_i32 = arith.constant 0 : i32
    %c0_i32_0 = arith.constant 0 : i32
    %c0_i32_1 = arith.constant 0 : i32
    return %c0_i32, %c0_i32_0 : i32, i32
  }
  func.func @transform_2(%arg0: i32, %arg1: i32) -> (i32, i32) {
    %c0_i32 = arith.constant 0 : i32
    %c0_i32_0 = arith.constant 0 : i32
    %c0_i32_1 = arith.constant 0 : i32
    return %c0_i32, %c0_i32_0 : i32, i32
  }
  func.func @transform_3(%arg0: i32, %arg1: i32) -> (i32, i32, i32, i32) {
    %c0_i32 = arith.constant 0 : i32
    %c0_i32_0 = arith.constant 0 : i32
    %c0_i32_1 = arith.constant 0 : i32
    return %arg0, %arg1, %c0_i32, %c0_i32_0 : i32, i32, i32, i32
  }
}

module attributes {stable_mosaic.version = 11 : i64} {
  func.func @_head_kernel(%arg0: i32, %arg1: memref<1x16x128xf32, #tpu.memory_space<vmem>>, %arg2: memref<1x16x128xf32, #tpu.memory_space<vmem>>, %arg3: memref<128x128xbf16, #tpu.memory_space<vmem>>, %arg4: memref<1x128xf32, #tpu.memory_space<vmem>>, %arg5: memref<128x128xbf16, #tpu.memory_space<vmem>>, %arg6: memref<1x128xf32, #tpu.memory_space<vmem>>, %arg7: memref<8x128xbf16, #tpu.memory_space<vmem>>, %arg8: memref<8x1xf32, #tpu.memory_space<vmem>>, %arg9: memref<1x8x16xf32, #tpu.memory_space<vmem>>) attributes {dimension_semantics = [#tpu.dimension_semantics<parallel>], iteration_bounds = array<i64: 2>, scalar_prefetch = 0 : i64, scratch_operands = 0 : i64, tpu.core_type = #tpu.core_type<tc>, window_params = [{transform_indices = @transform_0, window_bounds = array<i64: 1, 16, 128>}, {transform_indices = @transform_1, window_bounds = array<i64: 1, 16, 128>}, {pipeline_mode = #tpu.pipeline_mode<synchronous>, transform_indices = @transform_2, window_bounds = array<i64: 128, 128>}, {pipeline_mode = #tpu.pipeline_mode<synchronous>, transform_indices = @transform_3, window_bounds = array<i64: 1, 128>}, {pipeline_mode = #tpu.pipeline_mode<synchronous>, transform_indices = @transform_4, window_bounds = array<i64: 128, 128>}, {pipeline_mode = #tpu.pipeline_mode<synchronous>, transform_indices = @transform_5, window_bounds = array<i64: 1, 128>}, {pipeline_mode = #tpu.pipeline_mode<synchronous>, transform_indices = @transform_6, window_bounds = array<i64: 8, 128>}, {pipeline_mode = #tpu.pipeline_mode<synchronous>, transform_indices = @transform_7, window_bounds = array<i64: 8, 1>}, {transform_indices = @transform_8, window_bounds = array<i64: 1, 8, 16>}]} {
    %c0 = arith.constant 0 : index
    %c0_0 = arith.constant 0 : index
    %c0_1 = arith.constant 0 : index
    %0 = vector.load %arg1[%c0, %c0_0, %c0_1] : memref<1x16x128xf32, #tpu.memory_space<vmem>>, vector<1x16x128xf32>
    %1 = vector.shape_cast %0 : vector<1x16x128xf32> to vector<16x128xf32>
    %c0_2 = arith.constant 0 : index
    %c0_3 = arith.constant 0 : index
    %c0_4 = arith.constant 0 : index
    %2 = vector.load %arg2[%c0_2, %c0_3, %c0_4] : memref<1x16x128xf32, #tpu.memory_space<vmem>>, vector<1x16x128xf32>
    %3 = vector.shape_cast %2 : vector<1x16x128xf32> to vector<16x128xf32>
    %4 = arith.truncf %3 : vector<16x128xf32> to vector<16x128xbf16>
    %c0_5 = arith.constant 0 : index
    %c0_6 = arith.constant 0 : index
    %5 = vector.load %arg3[%c0_5, %c0_6] : memref<128x128xbf16, #tpu.memory_space<vmem>>, vector<128x128xbf16>
    %cst = arith.constant dense<0.000000e+00> : vector<16x128xf32>
    %6 = tpu.matmul %4, %5, %cst {dimension_numbers = #tpu.dot_dimension_numbers<[1], [0], [0], [1], [0, 0, 1, 1], [], []>} : vector<16x128xbf16>, vector<128x128xbf16>, vector<16x128xf32> -> vector<16x128xf32>
    %c0_7 = arith.constant 0 : index
    %c0_8 = arith.constant 0 : index
    %7 = vector.load %arg4[%c0_7, %c0_8] : memref<1x128xf32, #tpu.memory_space<vmem>>, vector<1x128xf32>
    %8 = vector.broadcast %7 : vector<1x128xf32> to vector<16x128xf32>
    %9 = arith.addf %6, %8 : vector<16x128xf32>
    %cst_9 = arith.constant 0.000000e+00 : f32
    %10 = vector.broadcast %cst_9 : f32 to vector<16x128xf32>
    %11 = arith.maximumf %9, %10 : vector<16x128xf32>
    %12 = arith.truncf %11 : vector<16x128xf32> to vector<16x128xbf16>
    %c0_10 = arith.constant 0 : index
    %c0_11 = arith.constant 0 : index
    %13 = vector.load %arg5[%c0_10, %c0_11] : memref<128x128xbf16, #tpu.memory_space<vmem>>, vector<128x128xbf16>
    %cst_12 = arith.constant dense<0.000000e+00> : vector<16x128xf32>
    %14 = tpu.matmul %12, %13, %cst_12 {dimension_numbers = #tpu.dot_dimension_numbers<[1], [0], [0], [1], [0, 0, 1, 1], [], []>} : vector<16x128xbf16>, vector<128x128xbf16>, vector<16x128xf32> -> vector<16x128xf32>
    %15 = arith.addf %1, %14 : vector<16x128xf32>
    %c0_13 = arith.constant 0 : index
    %c0_14 = arith.constant 0 : index
    %16 = vector.load %arg6[%c0_13, %c0_14] : memref<1x128xf32, #tpu.memory_space<vmem>>, vector<1x128xf32>
    %17 = vector.broadcast %16 : vector<1x128xf32> to vector<16x128xf32>
    %18 = arith.addf %15, %17 : vector<16x128xf32>
    %cst_15 = arith.constant 0.000000e+00 : f32
    %19 = vector.broadcast %cst_15 : f32 to vector<16x128xf32>
    %20 = arith.maximumf %18, %19 : vector<16x128xf32>
    %c0_16 = arith.constant 0 : index
    %c0_17 = arith.constant 0 : index
    %21 = vector.load %arg7[%c0_16, %c0_17] : memref<8x128xbf16, #tpu.memory_space<vmem>>, vector<8x128xbf16>
    %22 = arith.truncf %20 : vector<16x128xf32> to vector<16x128xbf16>
    %cst_18 = arith.constant dense<0.000000e+00> : vector<8x16xf32>
    %23 = tpu.matmul %21, %22, %cst_18 {dimension_numbers = #tpu.dot_dimension_numbers<[1], [1], [0], [0], [0, 0, 1, 0], [], []>} : vector<8x128xbf16>, vector<16x128xbf16>, vector<8x16xf32> -> vector<8x16xf32>
    %c0_19 = arith.constant 0 : index
    %c0_20 = arith.constant 0 : index
    %24 = vector.load %arg8[%c0_19, %c0_20] : memref<8x1xf32, #tpu.memory_space<vmem>>, vector<8x1xf32>
    %25 = vector.broadcast %24 : vector<8x1xf32> to vector<8x16xf32>
    %26 = arith.addf %23, %25 : vector<8x16xf32>
    %c0_21 = arith.constant 0 : index
    %c0_22 = arith.constant 0 : index
    %c0_23 = arith.constant 0 : index
    %27 = vector.load %arg9[%c0_21, %c0_22, %c0_23] : memref<1x8x16xf32, #tpu.memory_space<vmem>>, vector<1x8x16xf32>
    %28 = vector.shape_cast %27 : vector<1x8x16xf32> to vector<8x16xf32>
    %29 = vector.shape_cast %26 : vector<8x16xf32> to vector<1x8x16xf32>
    tpu.vector_store %arg9[%c0_21, %c0_22, %c0_23], %29 {strides = array<i32>} : memref<1x8x16xf32, #tpu.memory_space<vmem>>, vector<1x8x16xf32>,
    return
  }
  func.func @transform_0(%arg0: i32) -> (i32, i32, i32) {
    %c0_i32 = arith.constant 0 : i32
    %c0_i32_0 = arith.constant 0 : i32
    %c0_i32_1 = arith.constant 0 : i32
    return %arg0, %c0_i32, %c0_i32_0 : i32, i32, i32
  }
  func.func @transform_1(%arg0: i32) -> (i32, i32, i32) {
    %c0_i32 = arith.constant 0 : i32
    %c0_i32_0 = arith.constant 0 : i32
    %c0_i32_1 = arith.constant 0 : i32
    return %arg0, %c0_i32, %c0_i32_0 : i32, i32, i32
  }
  func.func @transform_2(%arg0: i32) -> (i32, i32) {
    %c0_i32 = arith.constant 0 : i32
    %c0_i32_0 = arith.constant 0 : i32
    %c0_i32_1 = arith.constant 0 : i32
    return %c0_i32, %c0_i32_0 : i32, i32
  }
  func.func @transform_3(%arg0: i32) -> (i32, i32) {
    %c0_i32 = arith.constant 0 : i32
    %c0_i32_0 = arith.constant 0 : i32
    %c0_i32_1 = arith.constant 0 : i32
    return %c0_i32, %c0_i32_0 : i32, i32
  }
  func.func @transform_4(%arg0: i32) -> (i32, i32) {
    %c0_i32 = arith.constant 0 : i32
    %c0_i32_0 = arith.constant 0 : i32
    %c0_i32_1 = arith.constant 0 : i32
    return %c0_i32, %c0_i32_0 : i32, i32
  }
  func.func @transform_5(%arg0: i32) -> (i32, i32) {
    %c0_i32 = arith.constant 0 : i32
    %c0_i32_0 = arith.constant 0 : i32
    %c0_i32_1 = arith.constant 0 : i32
    return %c0_i32, %c0_i32_0 : i32, i32
  }
  func.func @transform_6(%arg0: i32) -> (i32, i32) {
    %c0_i32 = arith.constant 0 : i32
    %c0_i32_0 = arith.constant 0 : i32
    %c0_i32_1 = arith.constant 0 : i32
    return %c0_i32, %c0_i32_0 : i32, i32
  }
  func.func @transform_7(%arg0: i32) -> (i32, i32) {
    %c0_i32 = arith.constant 0 : i32
    %c0_i32_0 = arith.constant 0 : i32
    %c0_i32_1 = arith.constant 0 : i32
    return %c0_i32, %c0_i32_0 : i32, i32
  }
  func.func @transform_8(%arg0: i32) -> (i32, i32, i32) {
    %c0_i32 = arith.constant 0 : i32
    %c0_i32_0 = arith.constant 0 : i32
    %c0_i32_1 = arith.constant 0 : i32
    return %arg0, %c0_i32, %c0_i32_0 : i32, i32, i32
  }
}

</mosaic_0001>

<bundles_post_ra>
// kernel: amrtsnet_forward.9
= control target key start
LH: loop header
LB: loop body
LE: loop exit
PB: predicated region body
PF: predicated region fallthrough
CT: control target
= control target key end

     0   :  { %s390_s9 = smov 0   ;;  %s414_s0 = inlined_call_operand.vmem [shape: f32[2,2,512], index: 0, kind: input, shape index: {}]   ;;  %s415_s1 = inlined_call_operand.vmem [shape: bf16[4,2], index: 1, kind: input, shape index: {}]   ;;  %s416_s2 = inlined_call_operand.vmem [shape: f32[2,4,512], index: 2, kind: output, shape index: {}]  }
   0x1 LB: > { %s337_s10 = sadd.s32 4294967295, %s371_s9   ;;  %p341_p0 = scmp.ge.s32.totalorder %s371_s9, 1  ;;  %s371_s9 = sphi %s390_s9, %s12_s9  }
   0x2   : > { %p112_p1 = scmp.lt.s32.totalorder %s371_s9, 3 }
   0x4   : > { %p113_p2 = pnand %p341_p0, %p112_p1 }
   0x5   : > { %p134_p3 = scmp.lt.s32.totalorder (!%p113_p2), %s337_s10, 1  ;;  %v151_v0 = vlaneseq (!%p113_p2)  ;;  %v373_v1 = vmov (!%p113_p2), 1983009808   ;;  %v374_v3 = vmov (!%p113_p2), 0   ;;  %vm177_vm0 = vcmask (!%p113_p2), 1040384  }
   0x6   : > { %116 = sbr.rel (%p113_p2) target bundleno = 245 (0xf5), region = 28  ;;  %v149_v2 = vunpack.c.l.s4 (!%p113_p2), %v373_v1  ;;  %222 = vmatprep.mubr.bf16.mxu0 (!%p113_p2), %v374_v3  ;;  %263 = vmatprep.mubr.bf16.mxu1 (!%p113_p2), %v374_v3  ;;  %v172_v19 = vld [vmem:[%s415_s1] sm:$0x3] (!%p113_p2)  ;;  %vm173_vm1 = vcmask (!%p113_p2), 15360  }
   0x7   : > { %v152_v4 = vshrl.u32 (!%p113_p2), %v151_v0, 7 }
   0x8   : > { %v150_v5 = vunpack.c.0.s8 (!%p113_p2), %v149_v2 }
   0xa   : > { %v153_v6 = vsub.s32 (!%p113_p2), %v150_v5, %v152_v4 }
   0xd   : > { %s418_s10 = smov (!%p134_p3, %s337_s10), 1 }
   0xe   : > { %s352_s11 = sshll.u32 %s418_s10, 3  ;;  %s353_s17 = sshll.u32 %s418_s10, 4 }
   0xf   : > { %s138_s14 = scalar_lea.vmem %s414_s0, %s352_s11  ;;  %s143_s20 = scalar_lea.vmem %s416_s2, %s353_s17 }
  0x10   : > { %v145_v7 = vld [vmem:[%s138_s14] sm:$0xff] }
  0x11   : > { %v154_v8 = vrot.slane %v145_v7, %v153_v6  ;;  %v147_v9 = vcombine.high %v145_v7, %v145_v7 }
  0x13   : > { %v162_v10 = vcombine.high %v154_v8, %v154_v8  ;;  %v168_v11 = vpack.c.bf16 %v154_v8, %v154_v8  ;;  %v161_v12 = vrot.slane %v147_v9, %v153_v6 }
  0x15   : > { %v169_v13 = vpack.c.bf16 %v162_v10, %v162_v10  ;;  %v179_v14 = vsel %vm177_vm0, %v168_v11, 0  ;;  %v163_v15 = vcombine.high %v161_v12, %v161_v12  ;;  %v170_v16 = vpack.c.bf16 %v161_v12, %v161_v12 }
  0x17   : > { %346 = vmatprep.subr.msk.bf16.mxu0 %vm177_vm0, %v169_v13  ;;  %v171_v17 = vpack.c.bf16 %v163_v15, %v163_v15  ;;  %v185_v18 = vsel %vm177_vm0, %v170_v16, 0 }
  0x18   : > { %191 = vmatpush1.bf16.msra.mxu0 %v179_v14 }
  0x19   : > { %348 = vmatprep.subr.msk.bf16.mxu1 %vm177_vm0, %v171_v17 }
  0x1a   : > { %232 = vmatpush1.bf16.msra.mxu1 %v185_v18 }
  0x1b   : > { %347 = vmatmul.mubr.msk.bf16.vlgmr.msra.gmra.mrb[0].mxu0 %vm173_vm1, %v172_v19 }
  0x1d   : > { %349 = vmatmul.mubr.msk.bf16.vlgmr.msra.gmra.mrb[0].mxu1 %vm173_vm1, %v172_v19 }
  0xee   : > { %v224_v20 = vpop.f32.mrb[0].mxu0 }
  0xef   : > { %v226_v21 = vpop.f32.mrb[1].mxu0 }
  0xf0   : > { %v276_v22 = vcombine.low %v224_v20, %v226_v21  ;;  %v228_v23 = vpop.f32.mrb[2].mxu0  ;;  %v265_v24 = vpop.f32.mrb[0].mxu1 }
  0xf1   : > { %v229_v25 = vpop.f32.mrb[3].mxu0  ;;  %v267_v26 = vpop.f32.mrb[1].mxu1 }
  0xf2   : > { %280 = vst [vmem:[%s143_s20] sm:$0xff] %v276_v22  ;;  %v277_v27 = vcombine.low %v265_v24, %v267_v26  ;;  %v269_v28 = vpop.f32.mrb[2].mxu1 }
  0xf3   : > { %v270_v29 = vpop.f32.mrb[3].mxu1 }
  0xf4   : > { %281 = vst [vmem:[%s143_s20 + $0x8] sm:$0xff] %v277_v27 }
  0xf5 PF: > { %s12_s9 = sadd.s32 1, %s371_s9  }
  0xf6   : > { %p9_p4 = scmp.ge.s32.totalorder %s12_s9, 4  }
  0xf8   :  { %11 = sbr.rel (!%p9_p4) target bundleno = 1 (0x1), region = 58 }

// kernel: amrtsnet_forward.6
= control target key start
LH: loop header
LB: loop body
LE: loop exit
PB: predicated region body
PF: predicated region fallthrough
CT: control target
= control target key end

     0   :  { %s932_s27 = smov 0   ;;  %s934_s28 = smov 0   ;;  %s1050_s0 = inlined_call_operand.vmem [shape: f32[2,256,3], index: 0, kind: input, shape index: {}]   ;;  %s1051_s1 = inlined_call_operand.vmem [shape: bf16[8,128], index: 1, kind: input, shape index: {}]   ;;  %s1052_s2 = inlined_call_operand.vmem [shape: bf16[2,8], index: 2, kind: input, shape index: {}]   ;;  %s1053_s3 = inlined_call_operand.vmem [shape: bf16[3,128], index: 3, kind: input, shape index: {}]   ;;  %s1054_s4 = inlined_call_operand.vmem [shape: f32[1,128], index: 4, kind: input, shape index: {}]   ;;  %s1055_s5 = inlined_call_operand.vmem [shape: bf16[3,128], index: 5, kind: input, shape index: {}]   ;;  %s1056_s6 = inlined_call_operand.vmem [shape: f32[1,128], index: 6, kind: input, shape index: {}]   ;;  %s1057_s7 = inlined_call_operand.vmem [shape: f32[2,16,128], index: 7, kind: output, shape index: {0}]   ;;  %s1058_s8 = inlined_call_operand.vmem [shape: f32[2,2,2,128], index: 8, kind: output, shape index: {1}]  }
   0x1   :  { %s936_s29 = smov 0   ;;  %s938_s30 = smov 0  }
   0x2   :  { %s940_s9 = smov 0  }
   0x3 LB: > { %s28_s10 = sadd.s32 1, %s874_s29  ;;  %s31_s11 = sadd.s32 1, %s878_s30  ;;  %s882_s9 = sphi %s940_s9, %s19_s9   ;;  %s878_s30 = sphi %s938_s30, %s1062_s30   ;;  %s874_s29 = sphi %s936_s29, %s1061_s29   ;;  %s870_s28 = sphi %s934_s28, %s1060_s28   ;;  %s866_s27 = sphi %s932_s27, %s1059_s27  }
   0x4   : > { %p29_p0 = scmp.ge.s32.totalorder %s28_s10, 2  ;;  %p733_p1 = scmp.ge.s32.totalorder %s882_s9, 1 }
   0x5   : > { %p288_p2 = scmp.lt.s32.totalorder %s882_s9, 5 }
   0x6   : > { %s1064_s10 = smov (%p29_p0, %s28_s10), 0  ;;  %s1066_s11 = smov (!%p29_p0, %s31_s11), %s878_s30 }
   0x7   : > { %p289_p3 = pnand %p733_p1, %p288_p2  ;;  %p33_p4 = scmp.ge.s32.totalorder %s1066_s11, 2 }
   0x8   : > { %s734_s12 = sshll.u32 (!%p289_p3), %s866_s27, 4  ;;  %p338_p5 = scmp.lt.s32.totalorder (!%p289_p3), %s870_s28, 1  ;;  %v884_v0 = vmov (!%p289_p3), 0.0   ;;  %vm885_vm0 = vmmov (!%p289_p3), 0   ;;  %v388_v25 = vld [vmem:[%s1051_s1] sm:$0xf] (!%p289_p3) }
   0x9   : > { %s1068_s11 = smov (%p33_p4, %s1066_s11), 0  ;;  %292 = sbr.rel (%p289_p3) target bundleno = 704 (0x2c0), region = 48 }
   0xa   : > { %763 = vmatprep.subr.bf16.mxu0 (!%p289_p3), %v884_v0  ;;  %p340_p6 = scmp.lt.s32.totalorder (!%p289_p3), %s734_s12, 31  ;;  %779 = vmatprep.mubr.msk.bf16.mxu0 (!%p289_p3), %vm885_vm0, %v884_v0  ;;  %vm490_vm1 = vcmask (!%p289_p3), 1040384   ;;  %vm491_vm2 = vcmask (!%p289_p3), 1041408   ;;  %v886_v26 = vmov (!%p289_p3), 65535   ;;  %vm435_vm3 = vcmask (!%p289_p3), 1043456   ;;  %p349_p7 = scmp.lt.s32.totalorder (!%p289_p3), %s866_s27, 1 }
   0xb   : > { %783 = vmatprep.subr.bf16.mxu1 (!%p289_p3), %v884_v0  ;;  %785 = vmatprep.mubr.msk.bf16.mxu1 (!%p289_p3), %vm885_vm0, %v884_v0  ;;  %v492_v27 = vsel (!%p289_p3), %vm490_vm1, 4294967295, %v886_v26  ;;  %v479_v31 = vld [vmem:[%s1053_s3] sm:$0x3] (!%p289_p3)  ;;  %vm431_vm4 = vcmask (!%p289_p3), 64512   ;;  %vm487_vm5 = vcmask (!%p289_p3), 23552  }
   0xc   : > { %v493_v32 = vsel (!%p289_p3), %vm491_vm2, %v492_v27, 0  ;;  %v430_v36 = vld [vmem:[%s1052_s2] sm:$0x1] (!%p289_p3) }
   0xd   : > { %v495_v37 = vand.u32 (!%p289_p3), %v493_v32, %v479_v31  ;;  %v538_v38 = vld [vmem:[%s1055_s5] sm:$0x3] (!%p289_p3) }
   0xe   : > { %v550_v39 = vand.u32 (!%p289_p3), %v538_v38, %v493_v32  ;;  %v742_v45 = vld [vmem:[%s1054_s4] ss:$0 sm:$0xff] (!%p289_p3) }
   0xf   : > { %v744_v52 = vld [vmem:[%s1056_s6] ss:$0 sm:$0xff] (!%p289_p3) }
  0x10   : > { %s1070_s28 = smov (!%p338_p5, %s870_s28), 1  ;;  %s1072_s12 = smov (!%p340_p6, %s734_s12), 31 }
  0x11   : > { %s735_s13 = sshll.u32 %s1070_s28, 5  ;;  %s1074_s27 = smov (!%p349_p7, %s866_s27), 1 }
  0x12   : > { %s343_s14 = sadd.s32 %s735_s13, %s1072_s12  ;;  %s737_s12 = sshll.u32 %s1070_s28, 1 }
  0x13   : > { %s736_s15 = sshll.u32 %s343_s14, 3  ;;  %s352_s13 = sadd.s32 %s737_s12, %s1074_s27 }
  0x14   : > { %s977_s18 = scalar_lea.vmem %s1050_s0, %s736_s15  ;;  %s738_s16 = sshll.u32 %s352_s13, 3 }
  0x15   : > { %v364_v1 = vld [vmem:[%s977_s18] sm:$0xff]  ;;  %v365_v2 = vld [vmem:[%s977_s18 + $0x8] sm:$0xff]  ;;  %v366_v3 = vld [vmem:[%s977_s18 + $0x10] sm:$0xff]  ;;  %s354_s19 = scalar_lea.vmem %s1057_s7, %s738_s16  ;;  %s740_s27 = sshll.u32 %s352_s13, 1 }
  0x16   : > { %v380_v4 = vpack.c.bf16 %v365_v2, %v364_v1  ;;  %v367_v5 = vld [vmem:[%s977_s18 + $0x18] sm:$0xff]  ;;  %v368_v7 = vld [vmem:[%s977_s18 + $0x20] sm:$0xff]  ;;  %v369_v8 = vld [vmem:[%s977_s18 + $0x28] sm:$0xff]  ;;  %s362_s23 = scalar_lea.vmem %s1058_s8, %s740_s27 }
  0x17   : > { %v381_v6 = vpack.c.bf16 %v367_v5, %v366_v3  ;;  %v382_v9 = vpack.c.bf16 %v369_v8, %v368_v7  ;;  %v370_v10 = vld [vmem:[%s977_s18 + $0x30] sm:$0xff]  ;;  %v371_v11 = vld [vmem:[%s977_s18 + $0x38] sm:$0xff]  ;;  %v372_v13 = vld [vmem:[%s977_s18 + $0x40] sm:$0xff] }
  0x18   : > { %764 = vmatpush3.bf16.msra.mxu0 %v380_v4  ;;  %v383_v12 = vpack.c.bf16 %v371_v11, %v370_v10  ;;  %v373_v14 = vld [vmem:[%s977_s18 + $0x48] sm:$0xff]  ;;  %v374_v16 = vld [vmem:[%s977_s18 + $0x50] sm:$0xff]  ;;  %v375_v17 = vld [vmem:[%s977_s18 + $0x58] sm:$0xff] }
  0x19   : > { %765 = vmatprep.subr.bf16.mxu0 %v884_v0  ;;  %v384_v15 = vpack.c.bf16 %v373_v14, %v372_v13  ;;  %v385_v18 = vpack.c.bf16 %v375_v17, %v374_v16  ;;  %v376_v19 = vld [vmem:[%s977_s18 + $0x60] sm:$0xff]  ;;  %v377_v20 = vld [vmem:[%s977_s18 + $0x68] sm:$0xff]  ;;  %v378_v22 = vld [vmem:[%s977_s18 + $0x70] sm:$0xff] }
  0x1a   : > { %v386_v21 = vpack.c.bf16 %v377_v20, %v376_v19  ;;  %v379_v23 = vld [vmem:[%s977_s18 + $0x78] sm:$0xff] }
  0x1b   : > { %v387_v24 = vpack.c.bf16 %v379_v23, %v378_v22 }
  0x1c   : > { %766 = vmatpush3.bf16.msra.mxu0 %v381_v6 }
  0x1d   : > { %767 = vmatprep.subr.bf16.mxu0 %v884_v0 }
  0x20   : > { %768 = vmatpush3.bf16.msra.mxu0 %v382_v9 }
  0x21   : > { %769 = vmatprep.subr.bf16.mxu0 %v884_v0 }
  0x24   : > { %770 = vmatpush3.bf16.msra.mxu0 %v383_v12 }
  0x25   : > { %771 = vmatprep.subr.bf16.mxu0 %v884_v0 }
  0x28   : > { %772 = vmatpush3.bf16.msra.mxu0 %v384_v15 }
  0x29   : > { %773 = vmatprep.subr.bf16.mxu0 %v884_v0 }
  0x2c   : > { %774 = vmatpush3.bf16.msra.mxu0 %v385_v18 }
  0x2d   : > { %775 = vmatprep.subr.bf16.mxu0 %v884_v0 }
  0x30   : > { %776 = vmatpush3.bf16.msra.mxu0 %v386_v21 }
  0x31   : > { %777 = vmatprep.subr.bf16.mxu0 %v884_v0 }
  0x34   : > { %778 = vmatpush3.bf16.msra.mxu0 %v387_v24 }
  0x37   : > { %780 = vmatmul.mubr.bf16.vlgmr.msra.gmra.mrb[0].mxu0 %v388_v25 }
 0x10a   : > { %v423_v28 = vpop.f32.mrb[0].mxu0 }
 0x10b   : > { %v429_v29 = vpack.c.bf16 %v423_v28, %v423_v28  ;;  %v781_v30 = vpop.f32.mrb[1].mxu0 }
 0x10c   : > { %v426_v33 = vpop.f32.mrb[2].mxu0 }
 0x10d   : > { %v782_v34 = vpop.f32.mrb[3].mxu0  ;;  %v437_v35 = vsel %vm435_vm3, %v429_v29, 0 }
 0x10e   : > { %784 = vmatpush3.bf16.msra.mxu1 %v437_v35 }
 0x10f   : > { %789 = vmatprep.subr.bf16.mxu1 %v884_v0 }
 0x111   : > { %786 = vmatmul.mubr.msk.bf16.vlgmr.msra.gmra.mrb[0].mxu1 %vm431_vm4, %v430_v36 }
 0x112   : > { %790 = vmatpush3.bf16.msra.mxu1 %v495_v37  ;;  %791 = vmatprep.mubr.msk.bf16.mxu1 %vm885_vm0, %v884_v0 }
 0x113   : > { %795 = vmatprep.subr.bf16.mxu1 %v884_v0 }
 0x119   : > { %792 = vmatmul.mubr.msk.bf16.vlgmr.msra.gmra.mrb[4].mxu1 %vm487_vm5, %v429_v29 }
 0x11a   : > { %796 = vmatpush3.bf16.msra.mxu1 %v550_v39  ;;  %797 = vmatprep.mubr.msk.bf16.mxu1 %vm885_vm0, %v884_v0 }
 0x1e4   : > { %v473_v40 = vpop.f32.mrb[0].mxu1 }
 0x1e5   : > { %v537_v41 = vpack.c.bf16 %v473_v40, %v473_v40  ;;  %v787_v42 = vpop.f32.mrb[1].mxu1 }
 0x1e6   : > { %v476_v43 = vpop.f32.mrb[2].mxu1 }
 0x1e7   : > { %v788_v44 = vpop.f32.mrb[3].mxu1  ;;  %798 = vmatmul.mubr.msk.bf16.vlgmr.msra.gmra.mrb[8].mxu1 %vm487_vm5, %v537_v41 }
 0x1ec   : > { %v531_v46 = vpop.f32.mrb[4].mxu1 }
 0x1ed   : > { %v532_v47 = vadd.f32 %v742_v45, %v531_v46  ;;  %v793_v48 = vpop.f32.mrb[5].mxu1 }
 0x1ee   : > { %v534_v49 = vpop.f32.mrb[6].mxu1 }
 0x1ef   : > { %v592_v50 = vmax.f32 %v532_v47, 0.0  ;;  %v794_v51 = vpop.f32.mrb[7].mxu1 }
 0x1f1   : > { %593 = vst [vmem:[%s354_s19] sm:$0xff] %v592_v50 }
 0x2ba   : > { %v586_v53 = vpop.f32.mrb[8].mxu1 }
 0x2bb   : > { %v587_v54 = vadd.f32 %v744_v52, %v586_v53  ;;  %v799_v55 = vpop.f32.mrb[9].mxu1 }
 0x2bc   : > { %v589_v56 = vpop.f32.mrb[10].mxu1 }
 0x2bd   : > { %v594_v57 = vmax.f32 %v587_v54, 0.0  ;;  %v800_v58 = vpop.f32.mrb[11].mxu1 }
 0x2bf   : > { %595 = vst [vmem:[%s362_s23] sm:$0x3] %v594_v57 }
 0x2c0 PF: > { %s19_s9 = sadd.s32 1, %s882_s9   ;;  %s1059_s27 = smov %s874_s29 }
 0x2c1   : > { %p16_p8 = scmp.ge.s32.totalorder %s19_s9, 6   ;;  %s1060_s28 = smov %s878_s30 }
 0x2c2   : > { %s1061_s29 = smov %s1064_s10  ;;  %s1062_s30 = smov %s1068_s11 }
 0x2c3   :  { %18 = sbr.rel (!%p16_p8) target bundleno = 3 (0x3), region = 90 }

// kernel: amrtsnet_forward.8
= control target key start
LH: loop header
LB: loop body
LE: loop exit
PB: predicated region body
PF: predicated region fallthrough
CT: control target
= control target key end

     0   :  { %s433_s9 = smov 0   ;;  %s435_s10 = smov 0   ;;  %s487_s0 = inlined_call_operand.vmem [shape: f32[2,2,2,128], index: 0, kind: input, shape index: {}]   ;;  %s488_s1 = inlined_call_operand.vmem [shape: bf16[4,2], index: 1, kind: input, shape index: {}]   ;;  %s489_s2 = inlined_call_operand.vmem [shape: f32[2,2,4,128], index: 2, kind: output, shape index: {}]  }
   0x1   :  { %s437_s11 = smov 0   ;;  %s439_s12 = smov 0  }
   0x2   :  { %s441_s13 = smov 0  }
   0x3 LB: > { %s21_s14 = sadd.s32 1, %s406_s11  ;;  %s24_s15 = sadd.s32 1, %s410_s12  ;;  %s414_s13 = sphi %s441_s13, %s12_s13   ;;  %s410_s12 = sphi %s439_s12, %s493_s12   ;;  %s406_s11 = sphi %s437_s11, %s492_s11   ;;  %s402_s10 = sphi %s435_s10, %s491_s10   ;;  %s398_s9 = sphi %s433_s9, %s490_s9  }
   0x4   : > { %p22_p0 = scmp.ge.s32.totalorder %s21_s14, 2  ;;  %p318_p1 = scmp.ge.s32.totalorder %s414_s13, 1 }
   0x5   : > { %p131_p2 = scmp.lt.s32.totalorder %s414_s13, 5 }
   0x6   : > { %s495_s14 = smov (%p22_p0, %s21_s14), 0  ;;  %s497_s15 = smov (!%p22_p0, %s24_s15), %s410_s12 }
   0x7   : > { %p132_p3 = pnand %p318_p1, %p131_p2  ;;  %p26_p4 = scmp.ge.s32.totalorder %s497_s15, 2 }
   0x8   : > { %p159_p5 = scmp.lt.s32.totalorder (!%p132_p3), %s402_s10, 1  ;;  %p161_p6 = scmp.lt.s32.totalorder (!%p132_p3), %s398_s9, 1  ;;  %v416_v0 = vmov (!%p132_p3), 0.0   ;;  %vm417_vm0 = vmmov (!%p132_p3), 0   ;;  %vm183_vm1 = vcmask (!%p132_p3), 1040384   ;;  %vm179_vm2 = vcmask (!%p132_p3), 15360  }
   0x9   : > { %s499_s15 = smov (%p26_p4, %s497_s15), 0  ;;  %135 = sbr.rel (%p132_p3) target bundleno = 243 (0xf3), region = 28 }
   0xa   : > { %328 = vmatprep.subr.bf16.mxu0 (!%p132_p3), %v416_v0  ;;  %330 = vmatprep.mubr.msk.bf16.mxu0 (!%p132_p3), %vm417_vm0, %v416_v0  ;;  %v178_v4 = vld [vmem:[%s488_s1] sm:$0x3] (!%p132_p3) }
  0x10   : > { %s501_s10 = smov (!%p159_p5, %s402_s10), 1  ;;  %s503_s9 = smov (!%p161_p6, %s398_s9), 1 }
  0x11   : > { %s319_s16 = sshll.u32 %s501_s10, 1 }
  0x12   : > { %s164_s17 = sadd.s32 %s319_s16, %s503_s9 }
  0x13   : > { %s320_s18 = sshll.u32 %s164_s17, 1  ;;  %s322_s24 = sshll.u32 %s164_s17, 2 }
  0x14   : > { %s166_s21 = scalar_lea.vmem %s487_s0, %s320_s18  ;;  %s174_s27 = scalar_lea.vmem %s489_s2, %s322_s24 }
  0x15   : > { %v176_v1 = vld [vmem:[%s166_s21] sm:$0x3] }
  0x16   : > { %v177_v2 = vpack.c.bf16 %v176_v1, %v176_v1 }
  0x18   : > { %v185_v3 = vsel %vm183_vm1, %v177_v2, 0 }
  0x19   : > { %329 = vmatpush3.bf16.msra.mxu0 %v185_v3 }
  0x1c   : > { %331 = vmatmul.mubr.msk.bf16.vlgmr.msra.gmra.mrb[0].mxu0 %vm179_vm2, %v178_v4 }
  0xef   : > { %v221_v5 = vpop.f32.mrb[0].mxu0 }
  0xf0   : > { %227 = vst [vmem:[%s174_s27] sm:$0xf] %v221_v5  ;;  %v332_v6 = vpop.f32.mrb[1].mxu0 }
  0xf1   : > { %v224_v7 = vpop.f32.mrb[2].mxu0 }
  0xf2   : > { %v333_v8 = vpop.f32.mrb[3].mxu0 }
  0xf3 PF: > { %s12_s13 = sadd.s32 1, %s414_s13   ;;  %s490_s9 = smov %s406_s11 }
  0xf4   : > { %p9_p7 = scmp.ge.s32.totalorder %s12_s13, 6   ;;  %s491_s10 = smov %s410_s12 }
  0xf5   : > { %s492_s11 = smov %s495_s14  ;;  %s493_s12 = smov %s499_s15 }
  0xf6   :  { %11 = sbr.rel (!%p9_p7) target bundleno = 3 (0x3), region = 58 }

// kernel: amrtsnet_forward.7
= control target key start
LH: loop header
LB: loop body
LE: loop exit
PB: predicated region body
PF: predicated region fallthrough
CT: control target
= control target key end

     0   :  { %s916_s21 = smov 0   ;;  %s1104_s0 = inlined_call_operand.vmem [shape: f32[2,4,128], index: 0, kind: input, shape index: {}]   ;;  %s1105_s1 = inlined_call_operand.vmem [shape: f32[128,128], index: 1, kind: input, shape index: {}]   ;;  %s1106_s2 = inlined_call_operand.vmem [shape: f32[128,128], index: 2, kind: input, shape index: {}]   ;;  %s1107_s3 = inlined_call_operand.vmem [shape: f32[1,128], index: 3, kind: input, shape index: {}]   ;;  %s1108_s4 = inlined_call_operand.vmem [shape: f32[1,128], index: 4, kind: input, shape index: {}]   ;;  %s1109_s5 = inlined_call_operand.vmem [shape: bf16[128,128], index: 5, kind: input, shape index: {}]   ;;  %s1110_s6 = inlined_call_operand.vmem [shape: f32[2,4,128], index: 6, kind: output, shape index: {}]  }
   0x1 LB: > { %s642_s22 = sadd.s32 4294967295, %s876_s21   ;;  %p646_p0 = scmp.ge.s32.totalorder %s876_s21, 1  ;;  %s876_s21 = sphi %s916_s21, %s16_s21  }
   0x2   : > { %p211_p1 = scmp.lt.s32.totalorder %s876_s21, 3 }
   0x4   : > { %p212_p2 = pnand %p646_p0, %p211_p1 }
   0x5   : > { %v260_v0 = vld [vmem:[%s1105_s1] sm:$0xff] (!%p212_p2)  ;;  %v261_v1 = vld [vmem:[%s1105_s1 + $0x8] sm:$0xff] (!%p212_p2)  ;;  %v262_v2 = vld [vmem:[%s1105_s1 + $0x10] sm:$0xff] (!%p212_p2)  ;;  %v878_v3 = vmov (!%p212_p2), 0.0|0.0   ;;  %vm879_vm0 = vmmov (!%p212_p2), 0   ;;  %v880_v6 = vmov (!%p212_p2), 0.0  }
   0x6   : > { %215 = sbr.rel (%p212_p2) target bundleno = 776 (0x308), region = 44  ;;  %795 = vmatprep.subr.bf16.mxu1 (!%p212_p2), %v878_v3  ;;  %v796_v4 = vpack.c.bf16 (!%p212_p2), %v261_v1, %v260_v0  ;;  %v263_v5 = vld [vmem:[%s1105_s1 + $0x18] sm:$0xff] (!%p212_p2)  ;;  %737 = vmatprep.mubr.msk.f32.mxu1 (!%p212_p2), %vm879_vm0, %v880_v6  ;;  %p239_p3 = scmp.lt.s32.totalorder (!%p212_p2), %s642_s22, 1  ;;  %v264_v8 = vld [vmem:[%s1105_s1 + $0x20] sm:$0xff] (!%p212_p2)  ;;  %v265_v9 = vld [vmem:[%s1105_s1 + $0x28] sm:$0xff] (!%p212_p2)  ;;  %vm249_vm1 = vcmask (!%p212_p2), 1043456  }
   0x7   : > { %775 = vmatprep.subr.bf16.mxu0 (!%p212_p2), %v880_v6  ;;  %791 = vmatprep.mubr.msk.bf16.mxu0 (!%p212_p2), %vm879_vm0, %v880_v6  ;;  %v799_v7 = vpack.c.bf16 (!%p212_p2), %v263_v5, %v262_v2  ;;  %v266_v10 = vld [vmem:[%s1105_s1 + $0x30] sm:$0xff] (!%p212_p2)  ;;  %v802_v11 = vpack.c.bf16 (!%p212_p2), %v265_v9, %v264_v8  ;;  %v267_v13 = vld [vmem:[%s1105_s1 + $0x38] sm:$0xff] (!%p212_p2)  ;;  %v268_v18 = vld [vmem:[%s1105_s1 + $0x40] sm:$0xff] (!%p212_p2) }
   0x8   : > { %797 = vmatpush3.bf16.msra.mxu1 (!%p212_p2), %v796_v4  ;;  %v805_v16 = vpack.c.bf16 (!%p212_p2), %v267_v13, %v266_v10  ;;  %v269_v19 = vld [vmem:[%s1105_s1 + $0x48] sm:$0xff] (!%p212_p2)  ;;  %v270_v23 = vld [vmem:[%s1105_s1 + $0x50] sm:$0xff] (!%p212_p2)  ;;  %v271_v24 = vld [vmem:[%s1105_s1 + $0x58] sm:$0xff] (!%p212_p2) }
   0x9   : > { %798 = vmatprep.subr.bf16.mxu1 (!%p212_p2), %v878_v3  ;;  %v808_v21 = vpack.c.bf16 (!%p212_p2), %v269_v19, %v268_v18  ;;  %v811_v26 = vpack.c.bf16 (!%p212_p2), %v271_v24, %v270_v23  ;;  %v272_v27 = vld [vmem:[%s1105_s1 + $0x60] sm:$0xff] (!%p212_p2)  ;;  %v273_v28 = vld [vmem:[%s1105_s1 + $0x68] sm:$0xff] (!%p212_p2)  ;;  %v274_v31 = vld [vmem:[%s1105_s1 + $0x70] sm:$0xff] (!%p212_p2) }
   0xa   : > { %v814_v30 = vpack.c.bf16 (!%p212_p2), %v273_v28, %v272_v27  ;;  %v275_v32 = vld [vmem:[%s1105_s1 + $0x78] sm:$0xff] (!%p212_p2)  ;;  %v390_v36 = vld [vmem:[%s1106_s2] sm:$0xff] (!%p212_p2)  ;;  %v391_v37 = vld [vmem:[%s1106_s2 + $0x8] sm:$0xff] (!%p212_p2) }
   0xb   : > { %v817_v34 = vpack.c.bf16 (!%p212_p2), %v275_v32, %v274_v31  ;;  %v820_v38 = vpack.c.bf16 (!%p212_p2), %v391_v37, %v390_v36  ;;  %v392_v39 = vld [vmem:[%s1106_s2 + $0x10] sm:$0xff] (!%p212_p2)  ;;  %v393_v40 = vld [vmem:[%s1106_s2 + $0x18] sm:$0xff] (!%p212_p2)  ;;  %v394_v42 = vld [vmem:[%s1106_s2 + $0x20] sm:$0xff] (!%p212_p2) }
   0xc   : > { %800 = vmatpush3.bf16.msra.mxu1 (!%p212_p2), %v799_v7  ;;  %v823_v41 = vpack.c.bf16 (!%p212_p2), %v393_v40, %v392_v39  ;;  %v395_v43 = vld [vmem:[%s1106_s2 + $0x28] sm:$0xff] (!%p212_p2)  ;;  %v396_v45 = vld [vmem:[%s1106_s2 + $0x30] sm:$0xff] (!%p212_p2)  ;;  %v397_v46 = vld [vmem:[%s1106_s2 + $0x38] sm:$0xff] (!%p212_p2) }
   0xd   : > { %s1112_s22 = smov (!%p239_p3, %s642_s22), 1  ;;  %801 = vmatprep.subr.bf16.mxu1 %v878_v3  ;;  %v826_v44 = vpack.c.bf16 %v395_v43, %v394_v42  ;;  %v829_v47 = vpack.c.bf16 %v397_v46, %v396_v45  ;;  %v398_v48 = vld [vmem:[%s1106_s2 + $0x40] sm:$0xff]  ;;  %v399_v49 = vld [vmem:[%s1106_s2 + $0x48] sm:$0xff]  ;;  %v400_v51 = vld [vmem:[%s1106_s2 + $0x50] sm:$0xff] }
   0xe   : > { %s647_s11 = sshll.u32 %s1112_s22, 2  ;;  %v832_v50 = vpack.c.bf16 %v399_v49, %v398_v48  ;;  %v401_v52 = vld [vmem:[%s1106_s2 + $0x58] sm:$0xff]  ;;  %v402_v54 = vld [vmem:[%s1106_s2 + $0x60] sm:$0xff]  ;;  %v403_v55 = vld [vmem:[%s1106_s2 + $0x68] sm:$0xff] }
   0xf   : > { %s242_s16 = scalar_lea.vmem %s1104_s0, %s647_s11  ;;  %v835_v53 = vpack.c.bf16 %v401_v52, %v400_v51  ;;  %v838_v56 = vpack.c.bf16 %v403_v55, %v402_v54  ;;  %v404_v57 = vld [vmem:[%s1106_s2 + $0x70] sm:$0xff]  ;;  %v405_v58 = vld [vmem:[%s1106_s2 + $0x78] sm:$0xff]  ;;  %v650_v27 = vld [vmem:[%s1108_s4] ss:$0 sm:$0xff]  ;;  %s246_s28 = scalar_lea.vmem %s1110_s6, %s647_s11 }
  0x10   : > { %v960_v12 = vld [vmem:[%s242_s16] sm:$0xf]  ;;  %803 = vmatpush3.bf16.msra.mxu1 %v802_v11  ;;  %v841_v59 = vpack.c.bf16 %v405_v58, %v404_v57  ;;  %v855_v31 = vld [vmem:[%s1109_s5 + $0x8] sm:$0xff]   ;;  %v856_v32 = vld [vmem:[%s1109_s5 + $0x10] sm:$0xff]  }
  0x11   : > { %v250_v14 = vsel %vm249_vm1, %v960_v12, 0.0  ;;  %804 = vmatprep.subr.bf16.mxu1 %v878_v3  ;;  %v860_v36 = vld [vmem:[%s1109_s5 + $0x30] sm:$0xff]   ;;  %v861_v37 = vld [vmem:[%s1109_s5 + $0x38] sm:$0xff]  }
  0x12   : > { %v251_v15 = vrot.slane %v250_v14, 4 }
  0x14   : > { %v252_v17 = vadd.f32 %v251_v15, %v250_v14  ;;  %806 = vmatpush3.bf16.msra.mxu1 %v805_v16 }
  0x15   : > { %807 = vmatprep.subr.bf16.mxu1 %v878_v3 }
  0x16   : > { %v253_v20 = vrot.slane %v252_v17, 2 }
  0x18   : > { %v254_v22 = vadd.f32 %v253_v20, %v252_v17  ;;  %809 = vmatpush3.bf16.msra.mxu1 %v808_v21 }
  0x19   : > { %810 = vmatprep.subr.bf16.mxu1 %v878_v3 }
  0x1a   : > { %v255_v25 = vrot.slane %v254_v22, 1 }
  0x1c   : > { %v256_v29 = vadd.f32 %v255_v25, %v254_v22  ;;  %812 = vmatpush3.bf16.msra.mxu1 %v811_v26  ;;  %v649_v25 = vld [vmem:[%s1107_s3] ss:$0 sm:$0xff] }
  0x1d   : > { %813 = vmatprep.subr.bf16.mxu1 %v878_v3 }
  0x1e   : > { %v258_v33 = vmul.f32 0.25, %v256_v29 }
  0x20   : > { %815 = vmatpush3.bf16.msra.mxu1 %v814_v30  ;;  %v259_v35 = vmul.f32 %v258_v33, %v960_v12  ;;  %v854_v30 = vld [vmem:[%s1109_s5] sm:$0xff]   ;;  %v857_v33 = vld [vmem:[%s1109_s5 + $0x18] sm:$0xff]  }
  0x21   : > { %816 = vmatprep.subr.bf16.mxu1 %v878_v3  ;;  %776 = vmatpush3.bf16.msra.mxu0 %v854_v30 }
  0x22   : > { %777 = vmatprep.subr.bf16.mxu0 %v880_v6 }
  0x24   : > { %818 = vmatpush3.bf16.msra.mxu1 %v817_v34  ;;  %v858_v34 = vld [vmem:[%s1109_s5 + $0x20] sm:$0xff]  }
  0x25   : > { %819 = vmatprep.subr.bf16.mxu1 %v878_v3  ;;  %778 = vmatpush3.bf16.msra.mxu0 %v855_v31 }
  0x26   : > { %779 = vmatprep.subr.bf16.mxu0 %v880_v6 }
  0x27   : > { %738 = vmatmul.mubr.f32.vlgmr.msra.gmra.mrb[0].mxu1 %v259_v35  ;;  %v859_v35 = vld [vmem:[%s1109_s5 + $0x28] sm:$0xff]  }
  0x28   : > { %772 = vmatprep.mubr.msk.f32.mxu1 %vm879_vm0, %v880_v6  ;;  %821 = vmatpush3.bf16.msra.mxu1 %v820_v38 }
  0x29   : > { %822 = vmatprep.subr.bf16.mxu1 %v878_v3  ;;  %780 = vmatpush3.bf16.msra.mxu0 %v856_v32 }
  0x2a   : > { %781 = vmatprep.subr.bf16.mxu0 %v880_v6 }
  0x2c   : > { %824 = vmatpush3.bf16.msra.mxu1 %v823_v41 }
  0x2d   : > { %825 = vmatprep.subr.bf16.mxu1 %v878_v3  ;;  %782 = vmatpush3.bf16.msra.mxu0 %v857_v33 }
  0x2e   : > { %783 = vmatprep.subr.bf16.mxu0 %v880_v6 }
  0x30   : > { %827 = vmatpush3.bf16.msra.mxu1 %v826_v44 }
  0x31   : > { %828 = vmatprep.subr.bf16.mxu1 %v878_v3  ;;  %784 = vmatpush3.bf16.msra.mxu0 %v858_v34 }
  0x32   : > { %785 = vmatprep.subr.bf16.mxu0 %v880_v6 }
  0x34   : > { %830 = vmatpush3.bf16.msra.mxu1 %v829_v47 }
  0x35   : > { %831 = vmatprep.subr.bf16.mxu1 %v878_v3  ;;  %786 = vmatpush3.bf16.msra.mxu0 %v859_v35 }
  0x36   : > { %787 = vmatprep.subr.bf16.mxu0 %v880_v6 }
  0x38   : > { %833 = vmatpush3.bf16.msra.mxu1 %v832_v50 }
  0x39   : > { %834 = vmatprep.subr.bf16.mxu1 %v878_v3  ;;  %788 = vmatpush3.bf16.msra.mxu0 %v860_v36 }
  0x3a   : > { %789 = vmatprep.subr.bf16.mxu0 %v880_v6 }
  0x3c   : > { %836 = vmatpush3.bf16.msra.mxu1 %v835_v53 }
  0x3d   : > { %837 = vmatprep.subr.bf16.mxu1 %v878_v3  ;;  %790 = vmatpush3.bf16.msra.mxu0 %v861_v37 }
  0x40   : > { %839 = vmatpush3.bf16.msra.mxu1 %v838_v56 }
  0x41   : > { %840 = vmatprep.subr.bf16.mxu1 %v878_v3 }
  0x44   : > { %842 = vmatpush3.bf16.msra.mxu1 %v841_v59 }
  0xfa   : > { %v342_v60 = vpop.f32.mrb[0].mxu1 }
  0xfb   : > { %v346_v61 = vsel %vm249_vm1, %v342_v60, 0.0  ;;  %v739_v62 = vpop.f32.mrb[1].mxu1 }
  0xfc   : > { %v347_v63 = vrot.slane %v346_v61, 4 }
  0xfe   : > { %v348_v0 = vadd.f32 %v347_v63, %v346_v61 }
 0x100   : > { %v349_v1 = vrot.slane %v348_v0, 2 }
 0x102   : > { %v350_v2 = vadd.f32 %v349_v1, %v348_v0 }
 0x104   : > { %v351_v4 = vrot.slane %v350_v2, 1 }
 0x106   : > { %v352_v3 = vadd.f32 %v351_v4, %v350_v2 }
 0x108   : > { %v353_v5 = vmul.f32 0.25, %v352_v3 }
 0x10a   : > { %v354_v7 = vsub.f32 %v342_v60, %v353_v5 }
 0x10c   : > { %v355_v8 = vmul.f32 %v354_v7, %v354_v7 }
 0x10e   : > { %v356_v9 = vsel %vm249_vm1, %v355_v8, 0.0 }
 0x10f   : > { %v357_v10 = vrot.slane %v356_v9, 4 }
 0x111   : > { %v358_v11 = vadd.f32 %v357_v10, %v356_v9 }
 0x113   : > { %v359_v13 = vrot.slane %v358_v11, 2 }
 0x115   : > { %v360_v14 = vadd.f32 %v359_v13, %v358_v11 }
 0x117   : > { %v361_v15 = vrot.slane %v360_v14, 1 }
 0x119   : > { %v362_v16 = vadd.f32 %v361_v15, %v360_v14 }
 0x11b   : > { %v363_v17 = vmul.f32 0.33333334, %v362_v16 }
 0x11d   : > { %862 = vrsqrt.f32 %v363_v17  ;;  %vm366_vm2 = vcmp.eq.f32.partialorder %v363_v17, inf  ;;  %v369_v20 = vand.u32 2147483648, %v363_v17  ;;  %vm368_vm3 = vcmp.eq.f32.partialorder %v363_v17, 0.0 }
 0x127   : > { %v863_v18 = vpop.eup %862 }
 0x128   : > { %v365_v19 = vmul.f32 %v863_v18, %v363_v17 }
 0x12a   : > { %v367_v21 = vsel %vm366_vm2, %v363_v17, %v365_v19 }
 0x12b   : > { %v370_v22 = vsel %vm368_vm3, %v369_v20, %v367_v21 }
 0x12c   : > { %v371_v23 = vadd.f32 1e-05, %v370_v22 }
 0x12e   : > { %864 = vrcp.f32 %v371_v23 }
 0x138   : > { %v865_v24 = vpop.eup %864 }
 0x139   : > { %v373_v26 = vmul.f32 %v865_v24, %v354_v7 }
 0x13b   : > { %v381_v28 = vmul.f32 %v649_v25, %v373_v26 }
 0x13d   : > { %v389_v29 = vadd.f32 %v650_v27, %v381_v28 }
 0x13f   : > { %773 = vmatmul.mubr.f32.vlgmr.msra.gmra.mrb[2].mxu1 %v389_v29 }
 0x212   : > { %v472_v38 = vpop.f32.mrb[2].mxu1 }
 0x213   : > { %v651_v39 = vmul.f32 -1.442695, %v472_v38  ;;  %v774_v40 = vpop.f32.mrb[3].mxu1 }
 0x215   : > { %866 = vpow2.f32 %v651_v39 }
 0x21f   : > { %v867_v41 = vpop.eup %866 }
 0x220   : > { %v479_v42 = vadd.f32 1.0, %v867_v41 }
 0x222   : > { %868 = vrcp.f32 %v479_v42 }
 0x22c   : > { %v869_v43 = vpop.eup %868 }
 0x22d   : > { %v482_v44 = vmul.f32 %v869_v43, %v960_v12 }
 0x22f   : > { %v483_v45 = vpack.c.bf16 %v482_v44, %v482_v44 }
 0x231   : > { %792 = vmatmul.mubr.bf16.vlgmr.msra.gmra.mrb[0].mxu0 %v483_v45 }
 0x304   : > { %v582_v46 = vpop.f32.mrb[0].mxu0 }
 0x305   : > { %588 = vst [vmem:[%s246_s28] sm:$0xf] %v582_v46  ;;  %v793_v6 = vpop.f32.mrb[1].mxu0 }
 0x306   : > { %v585_v47 = vpop.f32.mrb[2].mxu0 }
 0x307   : > { %v794_v48 = vpop.f32.mrb[3].mxu0 }
 0x308 PF: > { %s16_s21 = sadd.s32 1, %s876_s21  }
 0x309   : > { %p13_p4 = scmp.ge.s32.totalorder %s16_s21, 4  }
 0x30b   :  { %15 = sbr.rel (!%p13_p4) target bundleno = 1 (0x1), region = 74 }

// kernel: amrtsnet_forward.11
= control target key start
LH: loop header
LB: loop body
LE: loop exit
PB: predicated region body
PF: predicated region fallthrough
CT: control target
= control target key end

     0   :  { %s542_s12 = smov 0   ;;  %s544_s13 = smov 0   ;;  %s601_s0 = inlined_call_operand.vmem [shape: f32[2,8,4,4], index: 0, kind: input, shape index: {}]   ;;  %s602_s1 = inlined_call_operand.vmem [shape: bf16[16,4], index: 1, kind: input, shape index: {}]   ;;  %s603_s2 = inlined_call_operand.vmem [shape: bf16[4,16], index: 2, kind: input, shape index: {}]   ;;  %s604_s3 = inlined_call_operand.vmem [shape: f32[2,8,16,16], index: 3, kind: output, shape index: {}]  }
   0x1   :  { %s546_s14 = smov 0   ;;  %s548_s15 = smov 0  }
   0x2   :  { %s550_s16 = smov 0  }
   0x3 LB: > { %s22_s17 = sadd.s32 1, %s510_s14  ;;  %s25_s18 = sadd.s32 1, %s514_s15  ;;  %s518_s16 = sphi %s550_s16, %s13_s16   ;;  %s514_s15 = sphi %s548_s15, %s608_s15   ;;  %s510_s14 = sphi %s546_s14, %s607_s14   ;;  %s506_s13 = sphi %s544_s13, %s606_s13   ;;  %s502_s12 = sphi %s542_s12, %s605_s12  }
   0x4   : > { %p23_p0 = scmp.ge.s32.totalorder %s22_s17, 8  ;;  %p410_p1 = scmp.ge.s32.totalorder %s518_s16, 1 }
   0x5   : > { %p156_p2 = scmp.lt.s32.totalorder %s518_s16, 17 }
   0x6   : > { %s610_s17 = smov (%p23_p0, %s22_s17), 0  ;;  %s612_s18 = smov (!%p23_p0, %s25_s18), %s514_s15 }
   0x7   : > { %p157_p3 = pnand %p410_p1, %p156_p2  ;;  %p27_p4 = scmp.ge.s32.totalorder %s612_s18, 2 }
   0x8   : > { %v207_v0 = vld [vmem:[%s603_s2] sm:$0x3] (!%p157_p3)  ;;  %vm212_vm0 = vcmask (!%p157_p3), 1041408   ;;  %p187_p5 = scmp.lt.s32.totalorder (!%p157_p3), %s506_s13, 1  ;;  %v520_v1 = vmov (!%p157_p3), 0.0   ;;  %vm521_vm1 = vmmov (!%p157_p3), 0  }
   0x9   : > { %s614_s18 = smov (%p27_p4, %s612_s18), 0  ;;  %160 = sbr.rel (%p157_p3) target bundleno = 457 (0x1c9), region = 32 }
   0xa   : > { %425 = vmatprep.subr.bf16.mxu0 (!%p157_p3), %v520_v1  ;;  %v214_v2 = vsel (!%p157_p3), %vm212_vm0, %v207_v0, 0  ;;  %427 = vmatprep.mubr.msk.bf16.mxu0 (!%p157_p3), %vm521_vm1, %v520_v1  ;;  %p189_p6 = scmp.lt.s32.totalorder (!%p157_p3), %s502_s12, 7  ;;  %vm208_vm2 = vcmask (!%p157_p3), 31744   ;;  %v479_v11 = vld [vmem:[%s602_s1] sm:$0xff] (!%p157_p3)   ;;  %vm311_vm3 = vcmask (!%p157_p3), 130048  }
   0xb   : > { %426 = vmatpush3.bf16.msra.mxu0 (!%p157_p3), %v214_v2  ;;  %431 = vmatprep.subr.bf16.mxu1 (!%p157_p3), %v520_v1 }
   0xc   : > { %433 = vmatprep.mubr.msk.bf16.mxu1 (!%p157_p3), %vm521_vm1, %v520_v1 }
  0x10   : > { %s616_s13 = smov (!%p187_p5, %s506_s13), 1  ;;  %s618_s12 = smov (!%p189_p6, %s502_s12), 7 }
  0x11   : > { %s411_s21 = sshll.u32 %s616_s13, 3  ;;  %s413_s29 = sshll.u32 %s618_s12, 1 }
  0x12   : > { %s192_s22 = sadd.s32 %s411_s21, %s618_s12  ;;  %s414_s30 = sshll.u32 %s616_s13, 4 }
  0x13   : > { %s412_s23 = sshll.u32 %s192_s22, 2  ;;  %s201_s4 = sadd.s32 %s414_s30, %s413_s29 }
  0x14   : > { %s194_s26 = scalar_lea.vmem %s601_s0, %s412_s23  ;;  %s415_s5 = sshll.u32 %s201_s4, 3 }
  0x15   : > { %v205_v3 = vld [vmem:[%s194_s26] sm:$0xf]  ;;  %s203_s8 = scalar_lea.vmem %s604_s3, %s415_s5 }
  0x16   : > { %v206_v4 = vpack.c.bf16 %v205_v3, %v205_v3 }
  0x18   : > { %428 = vmatmul.mubr.msk.bf16.vlgmr.msra.gmra.mrb[0].mxu0 %vm208_vm2, %v206_v4 }
  0xeb   : > { %v250_v5 = vpop.f32.mrb[0].mxu0 }
  0xec   : > { %v258_v6 = vpack.c.bf16 %v250_v5, %v250_v5  ;;  %v429_v7 = vpop.f32.mrb[1].mxu0 }
  0xed   : > { %v253_v8 = vpop.f32.mrb[2].mxu0 }
  0xee   : > { %v430_v9 = vpop.f32.mrb[3].mxu0  ;;  %v268_v10 = vsel %vm212_vm0, %v258_v6, 0 }
  0xef   : > { %432 = vmatpush3.bf16.msra.mxu1 %v268_v10 }
  0xf2   : > { %434 = vmatmul.mubr.msk.bf16.vlgmr.msra.gmra.mrb[0].mxu1 %vm208_vm2, %v479_v11 }
 0x1c5   : > { %v304_v12 = vpop.f32.mrb[0].mxu1 }
 0x1c6   : > { %312 = vst.msk [vmem:[%s203_s8] sm:$0xff] %vm311_vm3, %v304_v12  ;;  %v435_v13 = vpop.f32.mrb[1].mxu1 }
 0x1c7   : > { %v307_v14 = vpop.f32.mrb[2].mxu1 }
 0x1c8   : > { %313 = vst.msk [vmem:[%s203_s8 + $0x8] sm:$0xff] %vm311_vm3, %v307_v14  ;;  %v436_v15 = vpop.f32.mrb[3].mxu1 }
 0x1c9 PF: > { %s13_s16 = sadd.s32 1, %s518_s16   ;;  %s605_s12 = smov %s510_s14 }
 0x1ca   : > { %p10_p7 = scmp.ge.s32.totalorder %s13_s16, 18   ;;  %s606_s13 = smov %s514_s15 }
 0x1cb   : > { %s607_s14 = smov %s610_s17  ;;  %s608_s15 = smov %s614_s18 }
 0x1cc   :  { %12 = sbr.rel (!%p10_p7) target bundleno = 3 (0x3), region = 62 }

// kernel: amrtsnet_forward.10
= control target key start
LH: loop header
LB: loop body
LE: loop exit
PB: predicated region body
PF: predicated region fallthrough
CT: control target
= control target key end

     0   :  { %s860_s27 = smov 0   ;;  %s955_s0 = inlined_call_operand.vmem [shape: f32[2,16,128], index: 0, kind: input, shape index: {}]   ;;  %s956_s1 = inlined_call_operand.vmem [shape: f32[2,16,128], index: 1, kind: input, shape index: {}]   ;;  %s957_s2 = inlined_call_operand.vmem [shape: bf16[128,128], index: 2, kind: input, shape index: {}]   ;;  %s958_s3 = inlined_call_operand.vmem [shape: f32[1,128], index: 3, kind: input, shape index: {}]   ;;  %s959_s4 = inlined_call_operand.vmem [shape: bf16[128,128], index: 4, kind: input, shape index: {}]   ;;  %s960_s5 = inlined_call_operand.vmem [shape: f32[1,128], index: 5, kind: input, shape index: {}]   ;;  %s961_s6 = inlined_call_operand.vmem [shape: bf16[8,128], index: 6, kind: input, shape index: {}]   ;;  %s962_s7 = inlined_call_operand.vmem [shape: f32[8,1], index: 7, kind: input, shape index: {}]   ;;  %s963_s8 = inlined_call_operand.vmem [shape: f32[2,8,16], index: 8, kind: output, shape index: {}]  }
   0x1 LB: > { %s678_s28 = sadd.s32 4294967295, %s810_s27   ;;  %p682_p0 = scmp.ge.s32.totalorder %s810_s27, 1  ;;  %s810_s27 = sphi %s860_s27, %s18_s27  }
   0x2   : > { %p272_p1 = scmp.lt.s32.totalorder %s810_s27, 3 }
   0x4   : > { %p273_p2 = pnand %p682_p0, %p272_p1 }
   0x5   : > { %v788_v0 = vld [vmem:[%s957_s2] sm:$0xff] (!%p273_p2)   ;;  %v812_v1 = vmov (!%p273_p2), 0.0   ;;  %v789_v2 = vld [vmem:[%s957_s2 + $0x8] sm:$0xff] (!%p273_p2)   ;;  %vm813_vm0 = vmmov (!%p273_p2), 0   ;;  %v790_v3 = vld [vmem:[%s957_s2 + $0x10] sm:$0xff] (!%p273_p2)   ;;  %p310_p3 = scmp.lt.s32.totalorder (!%p273_p2), %s678_s28, 1 }
   0x6   : > { %276 = sbr.rel (%p273_p2) target bundleno = 702 (0x2be), region = 52  ;;  %730 = vmatprep.subr.bf16.mxu0 (!%p273_p2), %v812_v1  ;;  %750 = vmatprep.subr.bf16.mxu1 (!%p273_p2), %v812_v1  ;;  %v796_v4 = vld [vmem:[%s959_s4] sm:$0xff] (!%p273_p2)   ;;  %v791_v5 = vld [vmem:[%s957_s2 + $0x18] sm:$0xff] (!%p273_p2)   ;;  %v797_v6 = vld [vmem:[%s959_s4 + $0x8] sm:$0xff] (!%p273_p2)   ;;  %v814_v31 = vmov (!%p273_p2), 0   ;;  %vm611_vm1 = vcmask (!%p273_p2), 130048  }
   0x7   : > { %731 = vmatpush3.bf16.msra.mxu0 (!%p273_p2), %v788_v0  ;;  %746 = vmatprep.mubr.msk.bf16.mxu0 (!%p273_p2), %vm813_vm0, %v812_v1  ;;  %v792_v7 = vld [vmem:[%s957_s2 + $0x20] sm:$0xff] (!%p273_p2)   ;;  %v798_v8 = vld [vmem:[%s959_s4 + $0x10] sm:$0xff] (!%p273_p2)   ;;  %v793_v9 = vld [vmem:[%s957_s2 + $0x28] sm:$0xff] (!%p273_p2)  }
   0x8   : > { %732 = vmatprep.subr.bf16.mxu0 (!%p273_p2), %v812_v1  ;;  %766 = vmatprep.mubr.msk.bf16.mxu1 (!%p273_p2), %vm813_vm0, %v812_v1  ;;  %v799_v10 = vld [vmem:[%s959_s4 + $0x18] sm:$0xff] (!%p273_p2)   ;;  %v794_v11 = vld [vmem:[%s957_s2 + $0x30] sm:$0xff] (!%p273_p2)   ;;  %v800_v12 = vld [vmem:[%s959_s4 + $0x20] sm:$0xff] (!%p273_p2)  }
   0x9   : > { %751 = vmatpush3.bf16.msra.mxu1 (!%p273_p2), %v796_v4  ;;  %v795_v13 = vld [vmem:[%s957_s2 + $0x38] sm:$0xff] (!%p273_p2)   ;;  %v801_v16 = vld [vmem:[%s959_s4 + $0x28] sm:$0xff] (!%p273_p2)   ;;  %v802_v18 = vld [vmem:[%s959_s4 + $0x30] sm:$0xff] (!%p273_p2)   ;;  %787 = vset.pattern.permute.xlu0 (!%p273_p2), %v814_v31 }
   0xa   : > { %752 = vmatprep.subr.bf16.mxu1 (!%p273_p2), %v812_v1  ;;  %v803_v19 = vld [vmem:[%s959_s4 + $0x38] sm:$0xff] (!%p273_p2)   ;;  %v688_v20 = vld [vmem:[%s958_s3] ss:$0 sm:$0xff] (!%p273_p2) }
   0xb   : > { %733 = vmatpush3.bf16.msra.mxu0 (!%p273_p2), %v789_v2  ;;  %v565_v30 = vld [vmem:[%s962_s7] sm:$0xff] (!%p273_p2) }
   0xc   : > { %734 = vmatprep.subr.bf16.mxu0 (!%p273_p2), %v812_v1  ;;  %568 = vperm.xlu0 (!%p273_p2), %787, %v565_v30   ;;  %v705_v34 = vld [vmem:[%s960_s5] ss:$0 sm:$0xff] (!%p273_p2) }
   0xd   : > { %753 = vmatpush3.bf16.msra.mxu1 %v797_v6  ;;  %s965_s28 = smov (!%p310_p3, %s678_s28), 1  ;;  %v563_v46 = vld [vmem:[%s961_s6] sm:$0xf] }
   0xe   : > { %754 = vmatprep.subr.bf16.mxu1 %v812_v1  ;;  %s708_s29 = sshll.u32 %s965_s28, 4  ;;  %s687_s14 = sshll.u32 %s965_s28, 3 }
   0xf   : > { %735 = vmatpush3.bf16.msra.mxu0 %v790_v3  ;;  %s319_s12 = scalar_lea.vmem %s956_s1, %s708_s29  ;;  %s314_s10 = scalar_lea.vmem %s955_s0, %s708_s29 }
  0x10   : > { %736 = vmatprep.subr.bf16.mxu0 %v812_v1  ;;  %v327_v14 = vld [vmem:[%s319_s12] sm:$0xff]  ;;  %v328_v15 = vld [vmem:[%s319_s12 + $0x8] sm:$0xff]  ;;  %s323_s17 = scalar_lea.vmem %s963_s8, %s687_s14 }
  0x11   : > { %755 = vmatpush3.bf16.msra.mxu1 %v798_v8  ;;  %v329_v17 = vpack.c.bf16 %v328_v15, %v327_v14  ;;  %v325_v32 = vld [vmem:[%s314_s10] sm:$0xff]  ;;  %v326_v35 = vld [vmem:[%s314_s10 + $0x8] sm:$0xff] }
  0x12   : > { %756 = vmatprep.subr.bf16.mxu1 %v812_v1 }
  0x13   : > { %737 = vmatpush3.bf16.msra.mxu0 %v791_v5 }
  0x14   : > { %738 = vmatprep.subr.bf16.mxu0 %v812_v1 }
  0x15   : > { %757 = vmatpush3.bf16.msra.mxu1 %v799_v10 }
  0x16   : > { %758 = vmatprep.subr.bf16.mxu1 %v812_v1 }
  0x17   : > { %739 = vmatpush3.bf16.msra.mxu0 %v792_v7 }
  0x18   : > { %740 = vmatprep.subr.bf16.mxu0 %v812_v1 }
  0x19   : > { %759 = vmatpush3.bf16.msra.mxu1 %v800_v12 }
  0x1a   : > { %760 = vmatprep.subr.bf16.mxu1 %v812_v1 }
  0x1b   : > { %741 = vmatpush3.bf16.msra.mxu0 %v793_v9 }
  0x1c   : > { %742 = vmatprep.subr.bf16.mxu0 %v812_v1 }
  0x1d   : > { %761 = vmatpush3.bf16.msra.mxu1 %v801_v16 }
  0x1e   : > { %762 = vmatprep.subr.bf16.mxu1 %v812_v1 }
  0x1f   : > { %743 = vmatpush3.bf16.msra.mxu0 %v794_v11 }
  0x20   : > { %744 = vmatprep.subr.bf16.mxu0 %v812_v1 }
  0x21   : > { %763 = vmatpush3.bf16.msra.mxu1 %v802_v18 }
  0x22   : > { %764 = vmatprep.subr.bf16.mxu1 %v812_v1 }
  0x23   : > { %745 = vmatpush3.bf16.msra.mxu0 %v795_v13 }
  0x24   : > { %770 = vmatprep.subr.bf16.mxu0 %v812_v1 }
  0x25   : > { %765 = vmatpush3.bf16.msra.mxu1 %v803_v19 }
  0x26   : > { %747 = vmatmul.mubr.bf16.vlgmr.msra.gmra.mrb[0].mxu0 %v329_v17 }
  0x27   : > { %772 = vmatprep.mubr.msk.bf16.mxu0 %vm813_vm0, %v812_v1 }
  0x8b   : > { %v569_v47 = vpop.permute.xlu0 %568 }
  0xf9   : > { %v435_v21 = vpop.f32.mrb[0].mxu0 }
  0xfa   : > { %v436_v22 = vadd.f32 %v688_v20, %v435_v21  ;;  %v748_v23 = vpop.f32.mrb[1].mxu0 }
  0xfb   : > { %v438_v24 = vpop.f32.mrb[2].mxu0 }
  0xfc   : > { %v439_v25 = vadd.f32 %v688_v20, %v438_v24  ;;  %v749_v26 = vpop.f32.mrb[3].mxu0  ;;  %v442_v27 = vmax.f32 %v436_v22, 0.0 }
  0xfe   : > { %v443_v28 = vmax.f32 %v439_v25, 0.0 }
 0x100   : > { %v444_v29 = vpack.c.bf16 %v443_v28, %v442_v27 }
 0x102   : > { %767 = vmatmul.mubr.bf16.vlgmr.msra.gmra.mrb[0].mxu1 %v444_v29 }
 0x1d5   : > { %v543_v33 = vpop.f32.mrb[0].mxu1 }
 0x1d6   : > { %v550_v36 = vadd.f32 %v543_v33, %v325_v32  ;;  %v768_v37 = vpop.f32.mrb[1].mxu1 }
 0x1d7   : > { %v546_v38 = vpop.f32.mrb[2].mxu1 }
 0x1d8   : > { %v559_v39 = vadd.f32 %v705_v34, %v550_v36  ;;  %v551_v40 = vadd.f32 %v546_v38, %v326_v35  ;;  %v769_v41 = vpop.f32.mrb[3].mxu1 }
 0x1da   : > { %v560_v42 = vadd.f32 %v705_v34, %v551_v40  ;;  %v561_v43 = vmax.f32 %v559_v39, 0.0 }
 0x1dc   : > { %v562_v44 = vmax.f32 %v560_v42, 0.0 }
 0x1de   : > { %v564_v45 = vpack.c.bf16 %v562_v44, %v561_v43 }
 0x1e0   : > { %771 = vmatpush3.bf16.xpose.msra.mxu0 %v564_v45 }
 0x1e7   : > { %773 = vmatmul.mubr.bf16.vlgmr.msra.gmra.mrb[4].mxu0 %v563_v46 }
 0x2ba   : > { %v605_v48 = vpop.f32.mrb[4].mxu0 }
 0x2bb   : > { %v606_v49 = vadd.f32 %v605_v48, %v569_v47  ;;  %v774_v50 = vpop.f32.mrb[5].mxu0 }
 0x2bc   : > { %v608_v51 = vpop.f32.mrb[6].mxu0 }
 0x2bd   : > { %612 = vst.msk [vmem:[%s323_s17] sm:$0xff] %vm611_vm1, %v606_v49  ;;  %v775_v52 = vpop.f32.mrb[7].mxu0 }
 0x2be PF: > { %s18_s27 = sadd.s32 1, %s810_s27  }
 0x2bf   : > { %p15_p4 = scmp.ge.s32.totalorder %s18_s27, 4  }
 0x2c1   :  { %17 = sbr.rel (!%p15_p4) target bundleno = 1 (0x1), region = 85 }

</bundles_post_ra>
